<compile_context>
chip_gen: v6e
topology: v6e:2x2x1
jax: 0.10.0
libtpu: 0.0.40
codegen_flags: <defaults>
</compile_context>

<pallas_src>
import functools
import math
import numpy as np

import jax
import jax.numpy as jnp
from jax.experimental import pallas as pl
from jax.experimental.pallas import tpu as pltpu


# --------------------------- deterministic parameter setup ---------------------------

def sinc_resample_kernel(orig_freq, new_freq, lowpass_filter_width=6, rolloff=0.99):
    """Reproduces torchaudio.transforms.Resample ('sinc_interp_hann') kernel (float64)."""
    g = math.gcd(int(orig_freq), int(new_freq))
    orig = int(orig_freq) // g
    new = int(new_freq) // g
    base_freq = min(orig, new) * rolloff
    width = int(math.ceil(lowpass_filter_width * orig / base_freq))
    idx = np.arange(-width, width + orig, dtype=np.float64) / orig      # K = 2*width + orig
    kernels = []
    for i in range(new):
        t = (-i / new + idx) * base_freq
        t = np.clip(t, -lowpass_filter_width, lowpass_filter_width)
        win = np.cos(t * np.pi / lowpass_filter_width / 2.0) ** 2
        tp = t * np.pi
        sinc = np.where(tp == 0.0, 1.0, np.sin(tp) / np.where(tp == 0.0, 1.0, tp))
        kernels.append(sinc * win)
    ker = np.stack(kernels) * (base_freq / orig)                         # (new, K)
    return ker, width, orig, new


def mel_fbanks(n_freqs, f_min, f_max, n_mels, sample_rate):
    """torchaudio.functional.melscale_fbanks (htk scale, norm=None), float64."""
    def hz_to_mel(f):
        return 2595.0 * np.log10(1.0 + f / 700.0)

    def mel_to_hz(m):
        return 700.0 * (10.0 ** (m / 2595.0) - 1.0)

    all_freqs = np.linspace(0.0, sample_rate // 2, n_freqs)
    m_pts = np.linspace(hz_to_mel(f_min), hz_to_mel(f_max), n_mels + 2)
    f_pts = mel_to_hz(m_pts)
    f_diff = f_pts[1:] - f_pts[:-1]                       # (n_mels + 1,)
    slopes = f_pts[None, :] - all_freqs[:, None]          # (n_freqs, n_mels + 2)
    down = -slopes[:, :-2] / f_diff[:-1]
    up = slopes[:, 2:] / f_diff[1:]
    return np.maximum(0.0, np.minimum(down, up))          # (n_freqs, n_mels)


# ----------------------------------- Pallas kernel -----------------------------------

def _fused_pipeline_kernel(mask_ref, x_ref, w1_ref, w2_ref, rev_ref, cs_ref, fb_ref,
                           out_ref, chunk_ref, *, nc, hop, nf):
    # mask_ref (SMEM, scalar prefetch): [f_start, f_end, t_start, t_end] int32
    # x_ref    : (1, nc+1, U)   zero-padded raw audio, U raw samples per row
    # w1/w2    : (U, hop)       banded sinc-resample matrices (consume rows c / c+1)
    # rev_ref  : (2, hop, hop)  reflect-pad permutation matrices (left, right)
    # cs_ref   : (2*hop, 2*nf)  [hann*cos | -hann*sin], freq bins zero-padded to nf lanes
    # fb_ref   : (nf, n_mels)   mel filterbank, rows zero-padded to nf
    # out_ref  : (1, nc+1, n_mels)
    # chunk_ref (VMEM scratch): (nc+2, hop) resampled signal incl. reflect-pad chunks

    # -- stage 1: sinc resample as two banded matmuls (lane-dense hop-wide rows) --------
    r = x_ref[0]                                              # (nc+1, U)
    xr = (jnp.dot(r[0:nc], w1_ref[...], preferred_element_type=jnp.float32) +
          jnp.dot(r[1:nc + 1], w2_ref[...], preferred_element_type=jnp.float32))  # (nc, hop)

    # -- stage 2: reflect ("center") padding, one hop-wide chunk on each side -----------
    lane = jax.lax.broadcasted_iota(jnp.int32, (1, hop), 1)
    left = jnp.where(lane == 0, xr[1:2],
                     jnp.dot(xr[0:1], rev_ref[0], preferred_element_type=jnp.float32))
    right = jnp.where(lane == hop - 1, xr[nc - 2:nc - 1],
                      jnp.dot(xr[nc - 1:nc], rev_ref[1], preferred_element_type=jnp.float32))
    chunk_ref[0:1, :] = left
    chunk_ref[1:nc + 1, :] = xr
    chunk_ref[nc + 1:nc + 2, :] = right

    # -- stage 3: Hann-windowed DFT (cos|sin fused), power spectrum, mel projection -----
    # frame t = [chunk[t], chunk[t+1]]  ->  reim = chunk[:-1] @ CS_lo + chunk[1:] @ CS_hi
    reim = (jnp.dot(chunk_ref[0:nc + 1, :], cs_ref[0:hop, :],
                    preferred_element_type=jnp.float32) +
            jnp.dot(chunk_ref[1:nc + 2, :], cs_ref[hop:2 * hop, :],
                    preferred_element_type=jnp.float32))      # (nc+1, 2*nf)
    re = reim[:, 0:nf]
    im = reim[:, nf:2 * nf]
    power = re * re + im * im                                 # (nc+1, nf)
    mel = jnp.dot(power, fb_ref[...], preferred_element_type=jnp.float32)  # (nc+1, n_mels)

    # -- stage 4: SpecAugment (shared frequency band + time band, fill value 0) ---------
    f0, f1, t0, t1 = mask_ref[0], mask_ref[1], mask_ref[2], mask_ref[3]
    n_frames, n_mels = mel.shape
    f_idx = jax.lax.broadcasted_iota(jnp.int32, (1, n_mels), 1)
    t_idx = jax.lax.broadcasted_iota(jnp.int32, (n_frames, 1), 0)
    masked = ((f_idx >= f0) & (f_idx < f1)) | ((t_idx >= t0) & (t_idx < t1))
    out_ref[0] = jnp.where(masked, jnp.float32(0.0), mel)


# ------------------------------------ the module --------------------------------------

class ProcessPipePallas:
    """Pallas/JAX port of ProcessPipe(original, new_sample, size=128, freq=400)."""

    def __init__(self, original, new_sample, size=128, freq=400):
        # ---- Resample (torchaudio defaults: sinc_interp_hann, width 6, rolloff .99) ----
        ker, self.width, self.orig, self.new = sinc_resample_kernel(original, new_sample)
        self.K = ker.shape[1]

        # ---- MelSpectrogram (torchaudio defaults: hop=n_fft//2, periodic Hann, power=2,
        #      center=True reflect pad, htk mel, norm=None, sample_rate=16000) -----------
        self.n_mels = size
        self.n_fft = freq
        self.hop = freq // 2
        self.n_freqs = freq // 2 + 1
        assert self.n_fft == 2 * self.hop
        # NOTE: the PyTorch module never passes sample_rate, so MelSpectrogram keeps its
        # default 16 kHz mel scale even after resampling — mirrored faithfully here.
        mel_sr = 16000

        # chunk layout: each hop-wide row of resampled audio consumes U raw samples
        assert self.hop % self.new == 0, (
            "TODO(synk): resample ratios with new !| hop need a per-phase band layout")
        self.U = self.orig * self.hop // self.new
        assert 2 * self.width <= self.U, (
            "TODO(synk): sinc band spans more than two chunk rows for this ratio")

        # banded resample matrices: xr_chunk[c] = R[c] @ W1 + R[c+1] @ W2
        band = np.zeros((2 * self.U, self.hop), dtype=np.float64)
        for s in range(self.hop):
            base = (s // self.new) * self.orig
            band[base:base + self.K, s] += ker[s % self.new]
        self.w1 = jnp.asarray(band[:self.U].astype(np.float32))
        self.w2 = jnp.asarray(band[self.U:].astype(np.float32))

        # reflect-pad permutation matrices (left / right), one hop-wide chunk each
        revl = np.zeros((self.hop, self.hop), dtype=np.float64)
        for s in range(1, self.hop):
            revl[self.hop - s, s] = 1.0
        revr = np.zeros((self.hop, self.hop), dtype=np.float64)
        for s in range(self.hop - 1):
            revr[self.hop - 2 - s, s] = 1.0
        self.rev = jnp.asarray(np.stack([revl, revr]).astype(np.float32))

        # fused Hann-window * DFT matrix, freq axis zero-padded 201 -> 256 lanes
        self.NF = ((self.n_freqs + 127) // 128) * 128
        n = np.arange(self.n_fft, dtype=np.float64)
        k = np.arange(self.n_freqs, dtype=np.float64)
        ang = 2.0 * np.pi * np.outer(n, k) / self.n_fft
        w = 0.5 - 0.5 * np.cos(2.0 * np.pi * n / self.n_fft)      # periodic Hann
        cs = np.zeros((self.n_fft, 2 * self.NF), dtype=np.float64)
        cs[:, :self.n_freqs] = w[:, None] * np.cos(ang)
        cs[:, self.NF:self.NF + self.n_freqs] = -w[:, None] * np.sin(ang)
        self.cs = jnp.asarray(cs.astype(np.float32))

        fb = mel_fbanks(self.n_freqs, 0.0, mel_sr / 2.0, self.n_mels, mel_sr)
        fb_pad = np.zeros((self.NF, self.n_mels), dtype=np.float64)
        fb_pad[:self.n_freqs] = fb
        self.fb = jnp.asarray(fb_pad.astype(np.float32))

        # SpecAugment params (module hard-codes 80 / 80)
        self.freq_mask_param = 80
        self.time_mask_param = 80

        # float64 copies kept only for the numpy self-check in __main__
        self._np_ker = ker
        self._np_fb = fb

    def _mask_params(self, key, n_frames):
        # torchaudio.functional.mask_along_axis (iid_masks=False, p=1.0):
        #   value     = rand() * mask_param
        #   min_value = rand() * (size - value)
        #   start, end = int(min_value), int(min_value) + int(value)
        k1, k2, k3, k4 = jax.random.split(key, 4)
        vf = jax.random.uniform(k1) * self.freq_mask_param
        mf = jax.random.uniform(k2) * (self.n_mels - vf)
        vt = jax.random.uniform(k3) * self.time_mask_param
        mt = jax.random.uniform(k4) * (n_frames - vt)
        f0 = mf.astype(jnp.int32)
        f1 = f0 + vf.astype(jnp.int32)
        t0 = mt.astype(jnp.int32)
        t1 = t0 + vt.astype(jnp.int32)
        return jnp.stack([f0, f1, t0, t1]).astype(jnp.int32)

    def __call__(self, x, key=None, aug=True):
        B, L = x.shape
        l_out = int(math.ceil(self.new * L / self.orig))        # resampled length
        assert l_out % self.hop == 0, (
            "TODO(synk): handle resampled lengths that are not a multiple of hop")
        nc = l_out // self.hop                                  # hop-wide resampled chunks
        assert nc >= 2
        n_frames = nc + 1
        nr = nc + 1                                             # raw-audio rows of U samples

        # Left zero-pad = filter half-width (as torchaudio); right zero-pad to nr*U total.
        # Extra right zeros beyond torchaudio's (width + orig) are never read by the band.
        total = nr * self.U
        right = total - L - self.width
        assert right >= self.width + self.orig
        xp = jnp.pad(x, ((0, 0), (self.width, right)))
        r = xp.reshape(B, nr, self.U)                           # free reshape, no gather

        if aug:
            mask_params = self._mask_params(key, n_frames)
        else:
            mask_params = jnp.zeros((4,), jnp.int32)

        kernel = functools.partial(_fused_pipeline_kernel, nc=nc, hop=self.hop, nf=self.NF)
        grid_spec = pltpu.PrefetchScalarGridSpec(
            num_scalar_prefetch=1,
            grid=(B,),
            in_specs=[
                pl.BlockSpec((1, nr, self.U), lambda b, m: (b, 0, 0)),
                pl.BlockSpec((self.U, self.hop), lambda b, m: (0, 0)),
                pl.BlockSpec((self.U, self.hop), lambda b, m: (0, 0)),
                pl.BlockSpec((2, self.hop, self.hop), lambda b, m: (0, 0, 0)),
                pl.BlockSpec((self.n_fft, 2 * self.NF), lambda b, m: (0, 0)),
                pl.BlockSpec((self.NF, self.n_mels), lambda b, m: (0, 0)),
            ],
            out_specs=pl.BlockSpec((1, n_frames, self.n_mels), lambda b, m: (b, 0, 0)),
            scratch_shapes=[pltpu.VMEM((nc + 2, self.hop), jnp.float32)],
        )
        mel = pl.pallas_call(
            kernel,
            out_shape=jax.ShapeDtypeStruct((B, n_frames, self.n_mels), jnp.float32),
            grid_spec=grid_spec,
            compiler_params=pltpu.CompilerParams(dimension_semantics=("parallel",)),
        )(mask_params, r, self.w1, self.w2, self.rev, self.cs, self.fb)

        # kernel emits lane-dense (B, T, n_mels); PyTorch convention is (B, n_mels, T).
        return jnp.transpose(mel, (0, 2, 1))


# ------------------------------- numpy reference (self-check) -------------------------

def _reference_numpy(pipe, x, mask):
    """float64 numpy re-implementation of the torchaudio pipeline."""
    B, L = x.shape
    ker, K = pipe._np_ker, pipe.K
    orig, new, width = pipe.orig, pipe.new, pipe.width
    l_out = int(math.ceil(new * L / orig))
    pad = pipe.n_fft // 2
    n_frames = 1 + l_out // pipe.hop
    n = np.arange(pipe.n_fft)
    win = 0.5 - 0.5 * np.cos(2.0 * np.pi * n / pipe.n_fft)
    f0, f1, t0, t1 = [int(v) for v in np.asarray(mask)]
    fi = np.arange(pipe.n_mels)[None, :]
    ti = np.arange(n_frames)[:, None]
    m = ((fi >= f0) & (fi < f1)) | ((ti >= t0) & (ti < t1))
    outs = []
    for b in range(B):
        xp = np.concatenate([np.zeros(width), x[b].astype(np.float64),
                             np.zeros(width + orig)])
        n_conv = (len(xp) - K) // orig + 1
        y = np.empty((new, n_conv))
        for c in range(n_conv):
            y[:, c] = ker @ xp[c * orig: c * orig + K]
        y = y.T.reshape(-1)[:l_out]
        ypad = np.concatenate([y[pad:0:-1], y, y[-2:-(pad + 2):-1]])
        spec = np.empty((n_frames, pipe.n_freqs))
        for t in range(n_frames):
            fr = ypad[t * pipe.hop: t * pipe.hop + pipe.n_fft] * win
            spec[t] = np.abs(np.fft.rfft(fr)) ** 2
        mel = spec @ pipe._np_fb
        outs.append(np.where(m, 0.0, mel).T)
    return np.stack(outs)


# --------------------------------------- demo -----------------------------------------

if __name__ == "__main__":
    key = jax.random.PRNGKey(0)
    kx, kmask = jax.random.split(key)
    # small deterministic waveform batch: (batch=2, samples=4000) @ 16 kHz
    x = jax.random.normal(kx, (2, 4000), dtype=jnp.float32)

    pipe = ProcessPipePallas(original=16000, new_sample=8000, size=128, freq=400)
    y = jax.block_until_ready(pipe(x, kmask, aug=True))

    # resampled length = 2000 -> frames = 1 + 2000 // 200 = 11 -> output (2, 128, 11)
    assert y.shape == (2, 128, 11), y.shape
    assert y.dtype == jnp.float32
    assert bool(jnp.all(jnp.isfinite(y)))

    # numerical self-check against a float64 numpy re-implementation of the same pipeline
    mask = pipe._mask_params(kmask, 11)
    ref = _reference_numpy(pipe, np.asarray(x), mask)
    np.testing.assert_allclose(np.asarray(y), ref, rtol=5e-2, atol=5e-2)

    print("KERNEL_OK")
</pallas_src>

<mosaic_0001>
module attributes {stable_mosaic.version = 11 : i64} {
  func.func @_fused_pipeline_kernel(%arg0: i32, %arg1: memref<4xi32, #tpu.memory_space<smem>>, %arg2: memref<1x11x400xf32, #tpu.memory_space<vmem>>, %arg3: memref<400x200xf32, #tpu.memory_space<vmem>>, %arg4: memref<400x200xf32, #tpu.memory_space<vmem>>, %arg5: memref<2x200x200xf32, #tpu.memory_space<vmem>>, %arg6: memref<400x512xf32, #tpu.memory_space<vmem>>, %arg7: memref<256x128xf32, #tpu.memory_space<vmem>>, %arg8: memref<1x11x128xf32, #tpu.memory_space<vmem>>, %arg9: memref<12x200xf32, #tpu.memory_space<vmem>>) attributes {dimension_semantics = [#tpu.dimension_semantics<parallel>], iteration_bounds = array<i64: 2>, scalar_prefetch = 1 : i64, scratch_operands = 1 : i64, tpu.core_type = #tpu.core_type<tc>, window_params = [{transform_indices = @transform_0, window_bounds = array<i64: 1, 11, 400>}, {pipeline_mode = #tpu.pipeline_mode<synchronous>, transform_indices = @transform_1, window_bounds = array<i64: 400, 200>}, {pipeline_mode = #tpu.pipeline_mode<synchronous>, transform_indices = @transform_2, window_bounds = array<i64: 400, 200>}, {pipeline_mode = #tpu.pipeline_mode<synchronous>, transform_indices = @transform_3, window_bounds = array<i64: 2, 200, 200>}, {pipeline_mode = #tpu.pipeline_mode<synchronous>, transform_indices = @transform_4, window_bounds = array<i64: 400, 512>}, {pipeline_mode = #tpu.pipeline_mode<synchronous>, transform_indices = @transform_5, window_bounds = array<i64: 256, 128>}, {transform_indices = @transform_6, window_bounds = array<i64: 1, 11, 128>}]} {
    %c0 = arith.constant 0 : index
    %c0_0 = arith.constant 0 : index
    %c0_1 = arith.constant 0 : index
    %0 = vector.load %arg2[%c0, %c0_0, %c0_1] : memref<1x11x400xf32, #tpu.memory_space<vmem>>, vector<1x11x400xf32>
    %1 = vector.shape_cast %0 : vector<1x11x400xf32> to vector<11x400xf32>
    %2 = vector.extract_strided_slice %1 {offsets = [0, 0], sizes = [10, 400], strides = [1, 1]} : vector<11x400xf32> to vector<10x400xf32>
    %c0_2 = arith.constant 0 : index
    %c0_3 = arith.constant 0 : index
    %3 = vector.load %arg3[%c0_2, %c0_3] : memref<400x200xf32, #tpu.memory_space<vmem>>, vector<400x200xf32>
    %cst = arith.constant dense<0.000000e+00> : vector<10x200xf32>
    %4 = tpu.matmul %2, %3, %cst {dimension_numbers = #tpu.dot_dimension_numbers<[1], [0], [0], [1], [0, 0, 1, 1], [], []>} : vector<10x400xf32>, vector<400x200xf32>, vector<10x200xf32> -> vector<10x200xf32>
    %5 = vector.extract_strided_slice %1 {offsets = [1, 0], sizes = [10, 400], strides = [1, 1]} : vector<11x400xf32> to vector<10x400xf32>
    %c0_4 = arith.constant 0 : index
    %c0_5 = arith.constant 0 : index
    %6 = vector.load %arg4[%c0_4, %c0_5] : memref<400x200xf32, #tpu.memory_space<vmem>>, vector<400x200xf32>
    %cst_6 = arith.constant dense<0.000000e+00> : vector<10x200xf32>
    %7 = tpu.matmul %5, %6, %cst_6 {dimension_numbers = #tpu.dot_dimension_numbers<[1], [0], [0], [1], [0, 0, 1, 1], [], []>} : vector<10x400xf32>, vector<400x200xf32>, vector<10x200xf32> -> vector<10x200xf32>
    %8 = arith.addf %4, %7 : vector<10x200xf32>
    %9 = tpu.iota {dimensions = array<i32: 1>} : vector<1x200xi32>
    %c0_i32 = arith.constant 0 : i32
    %10 = vector.broadcast %c0_i32 : i32 to vector<1x200xi32>
    %11 = arith.cmpi eq, %9, %10 : vector<1x200xi32>
    %12 = vector.extract_strided_slice %8 {offsets = [1, 0], sizes = [1, 200], strides = [1, 1]} : vector<10x200xf32> to vector<1x200xf32>
    %13 = vector.extract_strided_slice %8 {offsets = [0, 0], sizes = [1, 200], strides = [1, 1]} : vector<10x200xf32> to vector<1x200xf32>
    %c0_7 = arith.constant 0 : index
    %c0_8 = arith.constant 0 : index
    %c0_9 = arith.constant 0 : index
    %14 = vector.load %arg5[%c0_7, %c0_8, %c0_9] : memref<2x200x200xf32, #tpu.memory_space<vmem>>, vector<1x200x200xf32>
    %15 = vector.shape_cast %14 : vector<1x200x200xf32> to vector<200x200xf32>
    %cst_10 = arith.constant dense<0.000000e+00> : vector<1x200xf32>
    %16 = tpu.matmul %13, %15, %cst_10 {dimension_numbers = #tpu.dot_dimension_numbers<[1], [0], [0], [1], [0, 0, 1, 1], [], []>} : vector<1x200xf32>, vector<200x200xf32>, vector<1x200xf32> -> vector<1x200xf32>
    %17 = arith.select %11, %12, %16 : vector<1x200xi1>, vector<1x200xf32>
    %c199_i32 = arith.constant 199 : i32
    %18 = vector.broadcast %c199_i32 : i32 to vector<1x200xi32>
    %19 = arith.cmpi eq, %9, %18 : vector<1x200xi32>
    %20 = vector.extract_strided_slice %8 {offsets = [8, 0], sizes = [1, 200], strides = [1, 1]} : vector<10x200xf32> to vector<1x200xf32>
    %21 = vector.extract_strided_slice %8 {offsets = [9, 0], sizes = [1, 200], strides = [1, 1]} : vector<10x200xf32> to vector<1x200xf32>
    %c1 = arith.constant 1 : index
    %c0_11 = arith.constant 0 : index
    %c0_12 = arith.constant 0 : index
    %22 = vector.load %arg5[%c1, %c0_11, %c0_12] : memref<2x200x200xf32, #tpu.memory_space<vmem>>, vector<1x200x200xf32>
    %23 = vector.shape_cast %22 : vector<1x200x200xf32> to vector<200x200xf32>
    %cst_13 = arith.constant dense<0.000000e+00> : vector<1x200xf32>
    %24 = tpu.matmul %21, %23, %cst_13 {dimension_numbers = #tpu.dot_dimension_numbers<[1], [0], [0], [1], [0, 0, 1, 1], [], []>} : vector<1x200xf32>, vector<200x200xf32>, vector<1x200xf32> -> vector<1x200xf32>
    %25 = arith.select %19, %20, %24 : vector<1x200xi1>, vector<1x200xf32>
    %c0_14 = arith.constant 0 : index
    %c0_15 = arith.constant 0 : index
    %26 = vector.load %arg9[%c0_14, %c0_15] : memref<12x200xf32, #tpu.memory_space<vmem>>, vector<1x200xf32>
    tpu.vector_store %arg9[%c0_14, %c0_15], %17 {strides = array<i32>} : memref<12x200xf32, #tpu.memory_space<vmem>>, vector<1x200xf32>,
    %c1_16 = arith.constant 1 : index
    %c0_17 = arith.constant 0 : index
    %27 = vector.load %arg9[%c1_16, %c0_17] : memref<12x200xf32, #tpu.memory_space<vmem>>, vector<10x200xf32>
    tpu.vector_store %arg9[%c1_16, %c0_17], %8 {strides = array<i32>} : memref<12x200xf32, #tpu.memory_space<vmem>>, vector<10x200xf32>,
    %c11 = arith.constant 11 : index
    %c0_18 = arith.constant 0 : index
    %28 = vector.load %arg9[%c11, %c0_18] : memref<12x200xf32, #tpu.memory_space<vmem>>, vector<1x200xf32>
    tpu.vector_store %arg9[%c11, %c0_18], %25 {strides = array<i32>} : memref<12x200xf32, #tpu.memory_space<vmem>>, vector<1x200xf32>,
    %c0_19 = arith.constant 0 : index
    %c0_20 = arith.constant 0 : index
    %29 = vector.load %arg9[%c0_19, %c0_20] : memref<12x200xf32, #tpu.memory_space<vmem>>, vector<11x200xf32>
    %c0_21 = arith.constant 0 : index
    %c0_22 = arith.constant 0 : index
    %30 = vector.load %arg6[%c0_21, %c0_22] : memref<400x512xf32, #tpu.memory_space<vmem>>, vector<200x512xf32>
    %cst_23 = arith.constant dense<0.000000e+00> : vector<11x512xf32>
    %31 = tpu.matmul %29, %30, %cst_23 {dimension_numbers = #tpu.dot_dimension_numbers<[1], [0], [0], [1], [0, 0, 1, 1], [], []>} : vector<11x200xf32>, vector<200x512xf32>, vector<11x512xf32> -> vector<11x512xf32>
    %c1_24 = arith.constant 1 : index
    %c0_25 = arith.constant 0 : index
    %32 = vector.load %arg9[%c1_24, %c0_25] : memref<12x200xf32, #tpu.memory_space<vmem>>, vector<11x200xf32>
    %c200 = arith.constant 200 : index
    %c0_26 = arith.constant 0 : index
    %33 = vector.load %arg6[%c200, %c0_26] : memref<400x512xf32, #tpu.memory_space<vmem>>, vector<200x512xf32>
    %cst_27 = arith.constant dense<0.000000e+00> : vector<11x512xf32>
    %34 = tpu.matmul %32, %33, %cst_27 {dimension_numbers = #tpu.dot_dimension_numbers<[1], [0], [0], [1], [0, 0, 1, 1], [], []>} : vector<11x200xf32>, vector<200x512xf32>, vector<11x512xf32> -> vector<11x512xf32>
    %35 = arith.addf %31, %34 : vector<11x512xf32>
    %36 = vector.extract_strided_slice %35 {offsets = [0, 0], sizes = [11, 256], strides = [1, 1]} : vector<11x512xf32> to vector<11x256xf32>
    %37 = vector.extract_strided_slice %35 {offsets = [0, 256], sizes = [11, 256], strides = [1, 1]} : vector<11x512xf32> to vector<11x256xf32>
    %38 = arith.mulf %36, %36 : vector<11x256xf32>
    %39 = arith.mulf %37, %37 : vector<11x256xf32>
    %40 = arith.addf %38, %39 : vector<11x256xf32>
    %c0_28 = arith.constant 0 : index
    %c0_29 = arith.constant 0 : index
    %41 = vector.load %arg7[%c0_28, %c0_29] : memref<256x128xf32, #tpu.memory_space<vmem>>, vector<256x128xf32>
    %cst_30 = arith.constant dense<0.000000e+00> : vector<11x128xf32>
    %42 = tpu.matmul %40, %41, %cst_30 {dimension_numbers = #tpu.dot_dimension_numbers<[1], [0], [0], [1], [0, 0, 1, 1], [], []>} : vector<11x256xf32>, vector<256x128xf32>, vector<11x128xf32> -> vector<11x128xf32>
    %c0_31 = arith.constant 0 : index
    %43 = memref.load %arg1[%c0_31] : memref<4xi32, #tpu.memory_space<smem>>
    %c1_32 = arith.constant 1 : index
    %44 = memref.load %arg1[%c1_32] : memref<4xi32, #tpu.memory_space<smem>>
    %c2 = arith.constant 2 : index
    %45 = memref.load %arg1[%c2] : memref<4xi32, #tpu.memory_space<smem>>
    %c3 = arith.constant 3 : index
    %46 = memref.load %arg1[%c3] : memref<4xi32, #tpu.memory_space<smem>>
    %47 = tpu.iota {dimensions = array<i32: 1>} : vector<1x128xi32>
    %48 = tpu.iota {dimensions = array<i32: 0>} : vector<11x1xi32>
    %49 = vector.broadcast %43 : i32 to vector<1x128xi32>
    %50 = arith.cmpi sge, %47, %49 : vector<1x128xi32>
    %51 = vector.broadcast %44 : i32 to vector<1x128xi32>
    %52 = arith.cmpi slt, %47, %51 : vector<1x128xi32>
    %53 = arith.andi %50, %52 : vector<1x128xi1>
    %54 = vector.broadcast %45 : i32 to vector<11x1xi32>
    %55 = arith.cmpi sge, %48, %54 : vector<11x1xi32>
    %56 = vector.broadcast %46 : i32 to vector<11x1xi32>
    %57 = arith.cmpi slt, %48, %56 : vector<11x1xi32>
    %58 = arith.andi %55, %57 : vector<11x1xi1>
    %59 = vector.broadcast %53 : vector<1x128xi1> to vector<11x128xi1>
    %60 = vector.broadcast %58 : vector<11x1xi1> to vector<11x128xi1>
    %61 = arith.ori %59, %60 : vector<11x128xi1>
    %cst_33 = arith.constant 0.000000e+00 : f32
    %62 = vector.broadcast %cst_33 : f32 to vector<11x128xf32>
    %63 = arith.select %61, %62, %42 : vector<11x128xi1>, vector<11x128xf32>
    %c0_34 = arith.constant 0 : index
    %c0_35 = arith.constant 0 : index
    %c0_36 = arith.constant 0 : index
    %64 = vector.load %arg8[%c0_34, %c0_35, %c0_36] : memref<1x11x128xf32, #tpu.memory_space<vmem>>, vector<1x11x128xf32>
    %65 = vector.shape_cast %64 : vector<1x11x128xf32> to vector<11x128xf32>
    %66 = vector.shape_cast %63 : vector<11x128xf32> to vector<1x11x128xf32>
    tpu.vector_store %arg8[%c0_34, %c0_35, %c0_36], %66 {strides = array<i32>} : memref<1x11x128xf32, #tpu.memory_space<vmem>>, vector<1x11x128xf32>,
    return
  }
  func.func @transform_0(%arg0: i32, %arg1: memref<4xi32, #tpu.memory_space<smem>>) -> (i32, i32, i32) {
    %c0_i32 = arith.constant 0 : i32
    %c0_i32_0 = arith.constant 0 : i32
    %c0_i32_1 = arith.constant 0 : i32
    return %arg0, %c0_i32, %c0_i32_0 : i32, i32, i32
  }
  func.func @transform_1(%arg0: i32, %arg1: memref<4xi32, #tpu.memory_space<smem>>) -> (i32, i32) {
    %c0_i32 = arith.constant 0 : i32
    %c0_i32_0 = arith.constant 0 : i32
    %c0_i32_1 = arith.constant 0 : i32
    return %c0_i32, %c0_i32_0 : i32, i32
  }
  func.func @transform_2(%arg0: i32, %arg1: memref<4xi32, #tpu.memory_space<smem>>) -> (i32, i32) {
    %c0_i32 = arith.constant 0 : i32
    %c0_i32_0 = arith.constant 0 : i32
    %c0_i32_1 = arith.constant 0 : i32
    return %c0_i32, %c0_i32_0 : i32, i32
  }
  func.func @transform_3(%arg0: i32, %arg1: memref<4xi32, #tpu.memory_space<smem>>) -> (i32, i32, i32) {
    %c0_i32 = arith.constant 0 : i32
    %c0_i32_0 = arith.constant 0 : i32
    %c0_i32_1 = arith.constant 0 : i32
    %c0_i32_2 = arith.constant 0 : i32
    return %c0_i32, %c0_i32_0, %c0_i32_1 : i32, i32, i32
  }
  func.func @transform_4(%arg0: i32, %arg1: memref<4xi32, #tpu.memory_space<smem>>) -> (i32, i32) {
    %c0_i32 = arith.constant 0 : i32
    %c0_i32_0 = arith.constant 0 : i32
    %c0_i32_1 = arith.constant 0 : i32
    return %c0_i32, %c0_i32_0 : i32, i32
  }
  func.func @transform_5(%arg0: i32, %arg1: memref<4xi32, #tpu.memory_space<smem>>) -> (i32, i32) {
    %c0_i32 = arith.constant 0 : i32
    %c0_i32_0 = arith.constant 0 : i32
    %c0_i32_1 = arith.constant 0 : i32
    return %c0_i32, %c0_i32_0 : i32, i32
  }
  func.func @transform_6(%arg0: i32, %arg1: memref<4xi32, #tpu.memory_space<smem>>) -> (i32, i32, i32) {
    %c0_i32 = arith.constant 0 : i32
    %c0_i32_0 = arith.constant 0 : i32
    %c0_i32_1 = arith.constant 0 : i32
    return %arg0, %c0_i32, %c0_i32_0 : i32, i32, i32
  }
}

</mosaic_0001>

<bundles_post_ra>
// kernel: tpu_custom_call.1
= control target key start
LH: loop header
LB: loop body
LE: loop exit
PB: predicated region body
PF: predicated region fallthrough
CT: control target
= control target key end

     0   :  { %s2648_s0 = inlined_call_operand.vmem [shape: s32[4], index: 0, kind: input, shape index: {}]   ;;  %s2649_s1 = inlined_call_operand.vmem [shape: f32[2,11,400], index: 1, kind: input, shape index: {}]   ;;  %s2650_s2 = inlined_call_operand.hbm [shape: f32[400,200], index: 2, kind: input, shape index: {}]   ;;  %s2651_s3 = inlined_call_operand.hbm [shape: f32[400,200], index: 3, kind: input, shape index: {}]   ;;  %s2652_s4 = inlined_call_operand.hbm [shape: f32[2,200,200], index: 4, kind: input, shape index: {}]   ;;  %s2653_s5 = inlined_call_operand.hbm [shape: f32[400,512], index: 5, kind: input, shape index: {}]   ;;  %s2654_s6 = inlined_call_operand.hbm [shape: f32[256,128], index: 6, kind: input, shape index: {}]   ;;  %s2655_s7 = inlined_call_operand.vmem [shape: f32[2,11,128], index: 7, kind: output, shape index: {}]  }
   0x1   :  { %s12_s26 = sshll.u32 %s2648_s0, 4  ;;  %s13_s26 = int_to_ptr.vmem [resolvable:$true] %s12_s26 }
   0x2   :  { %s2190_s27 = scalar_lea.vmem %s13_s26, 16  ;;  %p2195_p1 = scmp.lt.s32.totalorder %s13_s26, %s13_s26 }
   0x3   :  { %p2191_p0 = scmp.ne.s32.totalorder %s13_s26, %s2190_s27  ;;  %p2196_p2 = scmp.lt.s32.totalorder %s2190_s27, %s2190_s27 }
   0x5   :  { %p2197_p3 = por %p2196_p2, %p2195_p1 }
   0x7   :  { %p2198_p4 = pnand %p2197_p3, %p2191_p0 }
   0x9   :  { %2201 = shalt.err (!%p2198_p4)  }
   0xa   :  { %s2354_s28 = smov [#allocation4]  }
   0xb   :  { %15 = dma.vmem_to_smem %s13_s26, 16, %s2354_s28, [#allocation3] }
   0xc   :  { %2336 = dma.done.wait [#allocation3], 16 }
   0xd   :  { %2337 = vsyncadd [#allocation3], 4294967280 }
   0xe   :  { %17 = sfence }
   0xf   :  { %18 = vsyncpa [#allocation6], 0 }
  0x10   :  { %19 = vsyncpa [#allocation8], 0 }
  0x11   :  { %20 = vsyncpa [#allocation11], 0  ;;  %s2410_s29 = smov 0  }
  0x12 LB: > { %s2416_s0 = sadd.s32 4294967295, %s2352_s29   ;;  %p2015_p5 = scmp.ge.s32.totalorder %s2352_s29, 1  ;;  %s2352_s29 = sphi %s2410_s29, %s26_s29  }
  0x13   : > { %p188_p6 = scmp.lt.s32.totalorder %s2352_s29, 3  ;;  %p2159_p7 = scmp.eq.s32.totalorder %s2416_s0, 0 }
  0x14   : > { %s2355_s8 = smov [#allocation7]   ;;  %s2356_s10 = smov [#allocation10]  }
  0x15   : > { %p2421_p8 = pnand %p2015_p5, %p188_p6  ;;  %s213_s9 = sshll.u32 %s2355_s8, 4  ;;  %s214_s9 = int_to_ptr.vmem [resolvable:$true] %s213_s9 }
  0x16   : > { %s239_s11 = sshll.u32 %s2356_s10, 4  ;;  %s2357_s13 = smov [#allocation5]   ;;  %s2427_s11 = int_to_ptr.vmem [resolvable:$true] %s239_s11 }
  0x17   : > { %p2143_p9 = pneg %p2421_p8  ;;  %s2435_s14 = sshll.u32 %s2357_s13, 4  ;;  %s201_s14 = int_to_ptr.vmem [resolvable:$true] %s2435_s14 }
  0x18   : > { %s2213_s16 = scalar_lea.vmem %s214_s9, 12800  ;;  %p2221_p1 = scmp.lt.s32.totalorder %s214_s9, %s214_s9 }
  0x19   : > { %p2431_p10 = pnand %p2159_p7, %p2143_p9  ;;  %p2214_p12 = scmp.ne.s32.totalorder %s214_s9, %s2213_s16 }
  0x1a   : > { %p2222_p2 = scmp.lt.s32.totalorder %s2213_s16, %s2213_s16 }
  0x1b   : > { %p2439_p11 = pneg %p2431_p10 }
  0x1c   : > { %p2223_p3 = por %p2222_p2, %p2221_p1 }
  0x1d   : > { %p2216_p13 = pnand %p2214_p12, %p2439_p11 }
  0x1f   : > { %p2217_p0 = pneg %p2216_p13 }
  0x21   : > { %p2224_p4 = pnand %p2223_p3, %p2217_p0 }
  0x23   : > { %2227 = shalt.err (!%p2224_p4)
}
  0x24   : > { %s2358_s17 = smov 256   ;;  %s2359_s18 = smov 16  }
  0x25   : > { %2149 = dma.hbm_to_vmem [thread:$0]  (!%p2431_p10), %s2651_s3, 12800, %s214_s9, [#allocation8], %s2358_s17, %s2358_s17, %s2359_s18  }
  0x26   : > { %s2239_s21 = scalar_lea.vmem %s2427_s11, 25600  ;;  %p2247_p12 = scmp.lt.s32.totalorder %s2427_s11, %s2427_s11 }
  0x27   : > { %p2240_p5 = scmp.ne.s32.totalorder %s2427_s11, %s2239_s21  ;;  %p2248_p13 = scmp.lt.s32.totalorder %s2239_s21, %s2239_s21 }
  0x29   : > { %p2242_p6 = pnand %p2240_p5, %p2439_p11  ;;  %p2249_p0 = por %p2248_p13, %p2247_p12 }
  0x2b   : > { %p2243_p9 = pneg %p2242_p6 }
  0x2d   : > { %p2250_p1 = pnand %p2249_p0, %p2243_p9 }
  0x2f   : > { %2253 = shalt.err (!%p2250_p1)
}
  0x30   : > { %s2360_s22 = smov 512   ;;  %s2361_s23 = smov 32  }
  0x31   : > { %2155 = dma.hbm_to_vmem [thread:$0]  (!%p2431_p10), %s2653_s5, 25600, %s2427_s11, [#allocation11], %s2360_s22, %s2360_s22, %s2361_s23  }
  0x32   : > { %s2362_s26 = smov [#allocation9]   ;;  %s2265_s28 = scalar_lea.vmem %s201_s14, 12800 }
  0x33   : > { %s226_s27 = sshll.u32 %s2362_s26, 4  ;;  %p2266_p2 = scmp.ne.s32.totalorder %s201_s14, %s2265_s28  ;;  %s227_s27 = int_to_ptr.vmem [resolvable:$true] %s226_s27 }
  0x34   : > { %p2273_p5 = scmp.lt.s32.totalorder %s201_s14, %s201_s14  ;;  %p2274_p6 = scmp.lt.s32.totalorder %s2265_s28, %s2265_s28 }
  0x35   : > { %p2268_p3 = pnand %p2266_p2, %p2439_p11 }
  0x36   : > { %p2275_p9 = por %p2274_p6, %p2273_p5 }
  0x37   : > { %p2269_p4 = pneg %p2268_p3 }
  0x39   : > { %p2276_p12 = pnand %p2275_p9, %p2269_p4 }
  0x3b   : > { %2279 = shalt.err (!%p2276_p12)
}
  0x3c   : > { %2146 = dma.hbm_to_vmem [thread:$0]  (!%p2431_p10), %s2650_s2, 12800, %s201_s14, [#allocation6], %s2358_s17, %s2358_s17, %s2359_s18  }
  0x3d   : > { %s2291_s10 = scalar_lea.vmem %s227_s27, 12800  ;;  %p2299_p2 = scmp.lt.s32.totalorder %s227_s27, %s227_s27 }
  0x3e   : > { %p2292_p13 = scmp.ne.s32.totalorder %s227_s27, %s2291_s10  ;;  %p2300_p3 = scmp.lt.s32.totalorder %s2291_s10, %s2291_s10 }
  0x40   : > { %p2294_p0 = pnand %p2292_p13, %p2439_p11  ;;  %p2301_p4 = por %p2300_p3, %p2299_p2 }
  0x42   : > { %p2295_p1 = pneg %p2294_p0 }
  0x44   : > { %p2302_p5 = pnand %p2301_p4, %p2295_p1 }
  0x46   : > { %2305 = shalt.err (!%p2302_p5)
}
  0x47   : > { %2152 = dma.hbm_to_vmem [thread:$0]  (!%p2431_p10), %s2652_s4, 12800, %s227_s27, [#allocation8], %s2358_s17, %s2358_s17, %s2359_s18  }
  0x48   : > { %s2363_s14 = smov [#allocation12]  }
  0x49   : > { %s252_s16 = sshll.u32 %s2363_s14, 4  ;;  %s253_s16 = int_to_ptr.vmem [resolvable:$true] %s252_s16 }
  0x4a   : > { %s2317_s19 = scalar_lea.vmem %s253_s16, 4096  ;;  %p2325_p13 = scmp.lt.s32.totalorder %s253_s16, %s253_s16 }
  0x4b   : > { %p2318_p6 = scmp.ne.s32.totalorder %s253_s16, %s2317_s19  ;;  %p2326_p0 = scmp.lt.s32.totalorder %s2317_s19, %s2317_s19 }
  0x4d   : > { %p2320_p9 = pnand %p2318_p6, %p2439_p11  ;;  %p2327_p1 = por %p2326_p0, %p2325_p13 }
  0x4f   : > { %p2321_p12 = pneg %p2320_p9 }
  0x51   : > { %p2328_p2 = pnand %p2327_p1, %p2321_p12 }
  0x53   : > { %2331 = shalt.err (!%p2328_p2)
}
  0x54   : > { %s2364_s20 = smov 128   ;;  %s2365_s21 = smov 8  }
  0x55   : > { %2158 = dma.hbm_to_vmem [thread:$0]  (!%p2431_p10), %s2654_s6, 4096, %s253_s16, [#allocation11], %s2364_s20, %s2364_s20, %s2365_s21  }
  0x56   : > { %276 = sbr.rel (%p2421_p8) target bundleno = 1080 (0x438), region = 44 }
  0x5b   : > { %2339 = dma.done.wait (%p2159_p7), [#allocation6], 12800  }
  0x5c   : > { %2341 = vsyncadd (%p2159_p7), [#allocation6], 4294954496 }
  0x5d   : > { %2343 = dma.done.wait (%p2159_p7), [#allocation8], 25600  }
  0x5e   : > { %2345 = vsyncadd (%p2159_p7), [#allocation8], 4294941696 }
  0x5f   : > { %2347 = dma.done.wait (%p2159_p7), [#allocation11], 29696  }
  0x60   : > { %2349 = vsyncadd (%p2159_p7), [#allocation11], 4294937600  ;;  %v471_v0 = vld [vmem:[#allocation7 + $0xf8] sm:$0xff]  ;;  %v470_v2 = vld [vmem:[#allocation7 + $0xf0] sm:$0xff]  ;;  %p322_p7 = scmp.lt.s32.totalorder %s2416_s0, 1  ;;  %vm548_vm0 = vcmask 1046528  }
  0x61   : > { %v535_v1 = vld [vmem:[#allocation7 + $0x2f8] sm:$0xff]  ;;  %572 = vmatprep.subr.mxu0 %v471_v0  ;;  %v534_v3 = vld [vmem:[#allocation7 + $0x2f0] sm:$0xff]  ;;  %v469_v4 = vld [vmem:[#allocation7 + $0xe8] sm:$0xff]  ;;  %vm567_vm1 = vcmask 130048   ;;  %vm939_vm2 = vcmask 588800   ;;  %vm1193_vm3 = vcmask 588801  }
  0x62   : > { %649 = vmatprep.subr.mxu1 %v535_v1  ;;  %v533_v5 = vld [vmem:[#allocation7 + $0x2e8] sm:$0xff]  ;;  %573 = vmatpush1.msra.mxu0 %v470_v2  ;;  %v468_v6 = vld [vmem:[#allocation7 + $0xe0] sm:$0xff]  ;;  %v467_v8 = vld [vmem:[#allocation7 + $0xd8] sm:$0xff]  ;;  %s2664_s0 = smov (!%p322_p7, %s2416_s0), 1  ;;  %vm1181_vm4 = vcmask 1040384   ;;  %vm1196_vm5 = vcmask 583680  }
  0x63   : > { %650 = vmatpush1.msra.mxu1 %v534_v3  ;;  %v532_v7 = vld [vmem:[#allocation7 + $0x2e0] sm:$0xff]  ;;  %574 = vmatprep.subr.mxu0 %v469_v4  ;;  %v531_v9 = vld [vmem:[#allocation7 + $0x2d8] sm:$0xff]  ;;  %v466_v10 = vld [vmem:[#allocation7 + $0xd0] sm:$0xff]  ;;  %s2051_s30 = sshll.u32 %s2664_s0, 6  ;;  %s1876_s18 = sld [smem:[#allocation4]] }
  0x64   : > { %651 = vmatprep.subr.mxu1 %v533_v5  ;;  %v530_v11 = vld [vmem:[#allocation7 + $0x2d0] sm:$0xff]  ;;  %575 = vmatpush1.msra.mxu0 %v468_v6  ;;  %v465_v12 = vld [vmem:[#allocation7 + $0xc8] sm:$0xff]  ;;  %v464_v14 = vld [vmem:[#allocation7 + $0xc0] sm:$0xff]  ;;  %s2517_s17 = scalar_lea.vmem %s2649_s1, %s2051_s30  ;;  %s2046_s24 = sld [smem:[#allocation4 + $0x1]] }
  0x65   : > { %652 = vmatpush1.msra.mxu1 %v532_v7  ;;  %v529_v13 = vld [vmem:[#allocation7 + $0x2c8] sm:$0xff]  ;;  %576 = vmatprep.subr.mxu0 %v467_v8  ;;  %v528_v15 = vld [vmem:[#allocation7 + $0x2c0] sm:$0xff]  ;;  %v463_v16 = vld [vmem:[#allocation7 + $0xb8] sm:$0xff]  ;;  %s2047_s25 = sld [smem:[#allocation4 + $0x2]]  ;;  %s2052_s27 = sshll.u32 %s2664_s0, 4 }
  0x66   : > { %653 = vmatprep.subr.mxu1 %v531_v9  ;;  %577 = vmatpush1.msra.mxu0 %v466_v10  ;;  %v527_v17 = vld [vmem:[#allocation7 + $0x2b8] sm:$0xff]  ;;  %v462_v18 = vld [vmem:[#allocation7 + $0xb0] sm:$0xff]  ;;  %v461_v20 = vld [vmem:[#allocation7 + $0xa8] sm:$0xff]  ;;  %s2048_s26 = sld [smem:[#allocation4 + $0x3]]  ;;  %s331_s9 = scalar_lea.vmem %s2655_s7, %s2052_s27 }
  0x67   : > { %654 = vmatpush1.msra.mxu1 %v530_v11  ;;  %578 = vmatprep.subr.mxu0 %v465_v12  ;;  %v526_v19 = vld [vmem:[#allocation7 + $0x2b0] sm:$0xff]  ;;  %v525_v21 = vld [vmem:[#allocation7 + $0x2a8] sm:$0xff]  ;;  %v460_v22 = vld [vmem:[#allocation7 + $0xa0] sm:$0xff] }
  0x68   : > { %655 = vmatprep.subr.mxu1 %v529_v13  ;;  %579 = vmatpush1.msra.mxu0 %v464_v14  ;;  %v524_v23 = vld [vmem:[#allocation7 + $0x2a0] sm:$0xff]  ;;  %v459_v24 = vld [vmem:[#allocation7 + $0x98] sm:$0xff]  ;;  %v458_v26 = vld [vmem:[#allocation7 + $0x90] sm:$0xff] }
  0x69   : > { %656 = vmatpush1.msra.mxu1 %v528_v15  ;;  %580 = vmatprep.subr.mxu0 %v463_v16  ;;  %v523_v25 = vld [vmem:[#allocation7 + $0x298] sm:$0xff]  ;;  %v522_v27 = vld [vmem:[#allocation7 + $0x290] sm:$0xff]  ;;  %v457_v28 = vld [vmem:[#allocation7 + $0x88] sm:$0xff] }
  0x6a   : > { %657 = vmatprep.subr.mxu1 %v527_v17  ;;  %581 = vmatpush1.msra.mxu0 %v462_v18  ;;  %v521_v29 = vld [vmem:[#allocation7 + $0x288] sm:$0xff]  ;;  %v456_v30 = vld [vmem:[#allocation7 + $0x80] sm:$0xff]  ;;  %v455_v32 = vld [vmem:[#allocation7 + $0x78] sm:$0xff] }
  0x6b   : > { %658 = vmatpush1.msra.mxu1 %v526_v19  ;;  %582 = vmatprep.subr.mxu0 %v461_v20  ;;  %v520_v31 = vld [vmem:[#allocation7 + $0x280] sm:$0xff]  ;;  %v519_v33 = vld [vmem:[#allocation7 + $0x278] sm:$0xff]  ;;  %v454_v34 = vld [vmem:[#allocation7 + $0x70] sm:$0xff] }
  0x6c   : > { %659 = vmatprep.subr.mxu1 %v525_v21  ;;  %583 = vmatpush1.msra.mxu0 %v460_v22  ;;  %v518_v35 = vld [vmem:[#allocation7 + $0x270] sm:$0xff]  ;;  %v453_v36 = vld [vmem:[#allocation7 + $0x68] sm:$0xff]  ;;  %v452_v38 = vld [vmem:[#allocation7 + $0x60] sm:$0xff] }
  0x6d   : > { %660 = vmatpush1.msra.mxu1 %v524_v23  ;;  %584 = vmatprep.subr.mxu0 %v459_v24  ;;  %v517_v37 = vld [vmem:[#allocation7 + $0x268] sm:$0xff]  ;;  %v516_v39 = vld [vmem:[#allocation7 + $0x260] sm:$0xff]  ;;  %v451_v40 = vld [vmem:[#allocation7 + $0x58] sm:$0xff] }
  0x6e   : > { %661 = vmatprep.subr.mxu1 %v523_v25  ;;  %585 = vmatpush1.msra.mxu0 %v458_v26  ;;  %v515_v41 = vld [vmem:[#allocation7 + $0x258] sm:$0xff]  ;;  %v450_v42 = vld [vmem:[#allocation7 + $0x50] sm:$0xff]  ;;  %v449_v44 = vld [vmem:[#allocation7 + $0x48] sm:$0xff] }
  0x6f   : > { %662 = vmatpush1.msra.mxu1 %v522_v27  ;;  %586 = vmatprep.subr.mxu0 %v457_v28  ;;  %v514_v43 = vld [vmem:[#allocation7 + $0x250] sm:$0xff]  ;;  %v513_v45 = vld [vmem:[#allocation7 + $0x248] sm:$0xff]  ;;  %v448_v46 = vld [vmem:[#allocation7 + $0x40] sm:$0xff] }
  0x70   : > { %663 = vmatprep.subr.mxu1 %v521_v29  ;;  %587 = vmatpush1.msra.mxu0 %v456_v30  ;;  %v512_v47 = vld [vmem:[#allocation7 + $0x240] sm:$0xff]  ;;  %v447_v48 = vld [vmem:[#allocation7 + $0x38] sm:$0xff]  ;;  %v446_v50 = vld [vmem:[#allocation7 + $0x30] sm:$0xff] }
  0x71   : > { %664 = vmatpush1.msra.mxu1 %v520_v31  ;;  %588 = vmatprep.subr.mxu0 %v455_v32  ;;  %v511_v49 = vld [vmem:[#allocation7 + $0x238] sm:$0xff]  ;;  %v510_v51 = vld [vmem:[#allocation7 + $0x230] sm:$0xff]  ;;  %v445_v52 = vld [vmem:[#allocation7 + $0x28] sm:$0xff] }
  0x72   : > { %665 = vmatprep.subr.mxu1 %v519_v33  ;;  %589 = vmatpush1.msra.mxu0 %v454_v34  ;;  %v509_v53 = vld [vmem:[#allocation7 + $0x228] sm:$0xff]  ;;  %v444_v54 = vld [vmem:[#allocation7 + $0x20] sm:$0xff]  ;;  %v443_v56 = vld [vmem:[#allocation7 + $0x18] sm:$0xff] }
  0x73   : > { %666 = vmatpush1.msra.mxu1 %v518_v35  ;;  %590 = vmatprep.subr.mxu0 %v453_v36  ;;  %v508_v55 = vld [vmem:[#allocation7 + $0x220] sm:$0xff]  ;;  %v507_v57 = vld [vmem:[#allocation7 + $0x218] sm:$0xff]  ;;  %v442_v58 = vld [vmem:[#allocation7 + $0x10] sm:$0xff] }
  0x74   : > { %667 = vmatprep.subr.mxu1 %v517_v37  ;;  %591 = vmatpush1.msra.mxu0 %v452_v38  ;;  %v506_v59 = vld [vmem:[#allocation7 + $0x210] sm:$0xff]  ;;  %v441_v60 = vld [vmem:[#allocation7 + $0x8] sm:$0xff]  ;;  %v2520_v61 = vld [vmem:[%s2517_s17 + $0x18] sm:$0xff] }
  0x75   : > { %668 = vmatpush1.msra.mxu1 %v516_v39  ;;  %592 = vmatprep.subr.mxu0 %v451_v40  ;;  %v2523_v62 = vld [vmem:[%s2517_s17 + $0x38] sm:$0x7]  ;;  %v505_v63 = vld [vmem:[#allocation7 + $0x208] sm:$0xff]  ;;  %v2526_v0 = vld [vmem:[%s2517_s17 + $0x10] sm:$0xff]  ;;  %v558_v6 = vrot.slane %v2520_v61, 1 }
  0x76   : > { %669 = vmatprep.subr.mxu1 %v515_v41  ;;  %593 = vmatpush1.msra.mxu0 %v450_v42  ;;  %v2529_v1 = vld [vmem:[%s2517_s17 + $0x30] sm:$0x7]  ;;  %v440_v2 = vld [vmem:[#allocation7] sm:$0xff]  ;;  %v503_v4 = vld [vmem:[#allocation7 + $0x1f8] sm:$0xff]  ;;  %v559_v7 = vrot.slane %v2523_v62, 1  ;;  %v555_v10 = vrot.slane %v2526_v0, 1 }
  0x77   : > { %670 = vmatpush1.msra.mxu1 %v514_v43  ;;  %594 = vmatprep.subr.mxu0 %v449_v44  ;;  %v504_v3 = vld [vmem:[#allocation7 + $0x200] sm:$0xff]  ;;  %v539_v5 = vld [vmem:[#allocation7 + $0x318] sm:$0xff]  ;;  %v502_v8 = vld [vmem:[#allocation7 + $0x1f0] sm:$0xff]  ;;  %v556_v11 = vrot.slane %v2529_v1, 1 }
  0x78   : > { %671 = vmatprep.subr.mxu1 %v513_v45  ;;  %595 = vmatpush1.msra.mxu0 %v448_v46  ;;  %v538_v9 = vld [vmem:[#allocation7 + $0x310] sm:$0xff]  ;;  %v501_v12 = vld [vmem:[#allocation7 + $0x1e8] sm:$0xff]  ;;  %v500_v14 = vld [vmem:[#allocation7 + $0x1e0] sm:$0xff]  ;;  %v560_v16 = vsel %vm548_vm0, %v558_v6, %v559_v7 }
  0x79   : > { %672 = vmatpush1.msra.mxu1 %v512_v47  ;;  %596 = vmatprep.subr.mxu0 %v447_v48  ;;  %v537_v13 = vld [vmem:[#allocation7 + $0x308] sm:$0xff]  ;;  %v536_v15 = vld [vmem:[#allocation7 + $0x300] sm:$0xff]  ;;  %v499_v17 = vld [vmem:[#allocation7 + $0x1d8] sm:$0xff]  ;;  %v557_v18 = vsel %vm548_vm0, %v555_v10, %v556_v11 }
  0x7a   : > { %673 = vmatprep.subr.mxu1 %v511_v49  ;;  %597 = vmatpush1.msra.mxu0 %v446_v50  ;;  %v371_v19 = vld [vmem:[#allocation5 + $0xf8] sm:$0xff]  ;;  %v498_v20 = vld [vmem:[#allocation7 + $0x1d0] sm:$0xff]  ;;  %v497_v22 = vld [vmem:[#allocation7 + $0x1c8] sm:$0xff] }
  0x7b   : > { %674 = vmatpush1.msra.mxu1 %v510_v51  ;;  %598 = vmatprep.subr.mxu0 %v445_v52  ;;  %v370_v21 = vld [vmem:[#allocation5 + $0xf0] sm:$0xff]  ;;  %v369_v23 = vld [vmem:[#allocation5 + $0xe8] sm:$0xff]  ;;  %v496_v24 = vld [vmem:[#allocation7 + $0x1c0] sm:$0xff] }
  0x7c   : > { %675 = vmatprep.subr.mxu1 %v509_v53  ;;  %599 = vmatpush1.msra.mxu0 %v444_v54  ;;  %v368_v25 = vld [vmem:[#allocation5 + $0xe0] sm:$0xff]  ;;  %v495_v26 = vld [vmem:[#allocation7 + $0x1b8] sm:$0xff]  ;;  %v494_v28 = vld [vmem:[#allocation7 + $0x1b0] sm:$0xff] }
  0x7d   : > { %676 = vmatpush1.msra.mxu1 %v508_v55  ;;  %600 = vmatprep.subr.mxu0 %v443_v56  ;;  %v367_v27 = vld [vmem:[#allocation5 + $0xd8] sm:$0xff]  ;;  %v366_v29 = vld [vmem:[#allocation5 + $0xd0] sm:$0xff]  ;;  %v493_v30 = vld [vmem:[#allocation7 + $0x1a8] sm:$0xff] }
  0x7e   : > { %677 = vmatprep.subr.mxu1 %v507_v57  ;;  %601 = vmatpush1.msra.mxu0 %v442_v58  ;;  %v365_v31 = vld [vmem:[#allocation5 + $0xc8] sm:$0xff]  ;;  %v492_v32 = vld [vmem:[#allocation7 + $0x1a0] sm:$0xff]  ;;  %v491_v34 = vld [vmem:[#allocation7 + $0x198] sm:$0xff] }
  0x7f   : > { %678 = vmatpush1.msra.mxu1 %v506_v59  ;;  %602 = vmatprep.subr.mxu0 %v441_v60  ;;  %v364_v33 = vld [vmem:[#allocation5 + $0xc0] sm:$0xff]  ;;  %v363_v35 = vld [vmem:[#allocation5 + $0xb8] sm:$0xff]  ;;  %v490_v36 = vld [vmem:[#allocation7 + $0x190] sm:$0xff] }
  0x80   : > { %679 = vmatprep.subr.mxu1 %v505_v63  ;;  %603 = vmatpush1.msra.mxu0 %v440_v2  ;;  %v362_v37 = vld [vmem:[#allocation5 + $0xb0] sm:$0xff]  ;;  %v489_v38 = vld [vmem:[#allocation7 + $0x188] sm:$0xff]  ;;  %v488_v40 = vld [vmem:[#allocation7 + $0x180] sm:$0xff] }
  0x81   : > { %680 = vmatpush1.msra.mxu1 %v504_v3  ;;  %604 = vmatprep.subr.mxu0 %v503_v4  ;;  %v361_v39 = vld [vmem:[#allocation5 + $0xa8] sm:$0xff]  ;;  %v360_v41 = vld [vmem:[#allocation5 + $0xa0] sm:$0xff]  ;;  %v487_v42 = vld [vmem:[#allocation7 + $0x178] sm:$0xff] }
  0x82   : > { %709 = vmatprep.subr.mxu1 %v539_v5  ;;  %605 = vmatpush2.msra.mxu0 %v502_v8  ;;  %v359_v43 = vld [vmem:[#allocation5 + $0x98] sm:$0xff]  ;;  %v486_v44 = vld [vmem:[#allocation7 + $0x170] sm:$0xff]  ;;  %v485_v46 = vld [vmem:[#allocation7 + $0x168] sm:$0xff] }
  0x83   : > { %710 = vmatpush2.msra.mxu1 %v538_v9  ;;  %606 = vmatprep.subr.mxu0 %v501_v12  ;;  %v358_v45 = vld [vmem:[#allocation5 + $0x90] sm:$0xff]  ;;  %v357_v47 = vld [vmem:[#allocation5 + $0x88] sm:$0xff]  ;;  %v484_v48 = vld [vmem:[#allocation7 + $0x160] sm:$0xff] }
  0x84   : > { %711 = vmatprep.subr.mxu1 %v537_v13  ;;  %607 = vmatpush2.msra.mxu0 %v500_v14  ;;  %v356_v49 = vld [vmem:[#allocation5 + $0x80] sm:$0xff]  ;;  %v483_v50 = vld [vmem:[#allocation7 + $0x158] sm:$0xff]  ;;  %v482_v52 = vld [vmem:[#allocation7 + $0x150] sm:$0xff] }
  0x85   : > { %712 = vmatpush2.msra.mxu1 %v536_v15  ;;  %2032 = vmatprep.mubr.msk.f32.mxu1 %vm567_vm1, %v560_v16  ;;  %v355_v51 = vld [vmem:[#allocation5 + $0x78] sm:$0xff]  ;;  %v354_v53 = vld [vmem:[#allocation5 + $0x70] sm:$0xff]  ;;  %v481_v54 = vld [vmem:[#allocation7 + $0x148] sm:$0xff] }
  0x86   : > { %608 = vmatprep.subr.mxu0 %v499_v17  ;;  %714 = vmatmul.mubr.f32.vlgmr.msra.gmra.mxu1 %v557_v18  ;;  %v353_v55 = vld [vmem:[#allocation5 + $0x68] sm:$0xff]  ;;  %v480_v56 = vld [vmem:[#allocation7 + $0x140] sm:$0xff]  ;;  %v479_v58 = vld [vmem:[#allocation7 + $0x138] sm:$0xff] }
  0x87   : > { %730 = vmatprep.subr.mxu1 %v371_v19  ;;  %609 = vmatpush2.msra.mxu0 %v498_v20  ;;  %v352_v57 = vld [vmem:[#allocation5 + $0x60] sm:$0xff]  ;;  %v351_v59 = vld [vmem:[#allocation5 + $0x58] sm:$0xff]  ;;  %v478_v60 = vld [vmem:[#allocation7 + $0x130] sm:$0xff] }
  0x88   : > { %731 = vmatpush1.msra.mxu1 %v370_v21  ;;  %610 = vmatprep.subr.mxu0 %v497_v22  ;;  %v2543_v63 = vld [vmem:[%s2517_s17 + $0x8] sm:$0xff]  ;;  %v350_v3 = vld [vmem:[#allocation5 + $0x50] sm:$0xff]  ;;  %v2549_v4 = vld [vmem:[%s2517_s17] sm:$0xff] }
  0x89   : > { %732 = vmatprep.subr.mxu1 %v369_v23  ;;  %611 = vmatpush2.msra.mxu0 %v496_v24  ;;  %v2546_v2 = vld [vmem:[%s2517_s17 + $0x28] sm:$0x7]  ;;  %v2552_v5 = vld [vmem:[%s2517_s17 + $0x20] sm:$0x7]  ;;  %v552_v12 = vrot.slane %v2543_v63, 1  ;;  %v475_v14 = vld [vmem:[#allocation7 + $0x118] sm:$0xff] }
  0x8a   : > { %733 = vmatpush1.msra.mxu1 %v368_v25  ;;  %612 = vmatprep.subr.mxu0 %v495_v26  ;;  %v477_v6 = vld [vmem:[#allocation7 + $0x128] sm:$0xff]  ;;  %v476_v9 = vld [vmem:[#allocation7 + $0x120] sm:$0xff]  ;;  %v553_v13 = vrot.slane %v2546_v2, 1  ;;  %v347_v15 = vld [vmem:[#allocation5 + $0x38] sm:$0xff]  ;;  %v549_v16 = vrot.slane %v2549_v4, 1  ;;  %v550_v17 = vrot.slane %v2552_v5, 1 }
  0x8b   : > { %734 = vmatprep.subr.mxu1 %v367_v27  ;;  %613 = vmatpush2.msra.mxu0 %v494_v28  ;;  %v349_v8 = vld [vmem:[#allocation5 + $0x48] sm:$0xff]  ;;  %v348_v10 = vld [vmem:[#allocation5 + $0x40] sm:$0xff]  ;;  %v474_v18 = vld [vmem:[#allocation7 + $0x110] sm:$0xff] }
  0x8c   : > { %735 = vmatpush1.msra.mxu1 %v366_v29  ;;  %614 = vmatprep.subr.mxu0 %v493_v30  ;;  %v346_v19 = vld [vmem:[#allocation5 + $0x30] sm:$0xff]  ;;  %v473_v20 = vld [vmem:[#allocation7 + $0x108] sm:$0xff]  ;;  %v472_v22 = vld [vmem:[#allocation7 + $0x100] sm:$0xff]  ;;  %v554_v23 = vsel %vm548_vm0, %v552_v12, %v553_v13  ;;  %v551_v25 = vsel %vm548_vm0, %v549_v16, %v550_v17 }
  0x8d   : > { %736 = vmatprep.subr.mxu1 %v365_v31  ;;  %615 = vmatpush2.msra.mxu0 %v492_v32  ;;  %v345_v21 = vld [vmem:[#allocation5 + $0x28] sm:$0xff]  ;;  %v344_v24 = vld [vmem:[#allocation5 + $0x20] sm:$0xff]  ;;  %v343_v26 = vld [vmem:[#allocation5 + $0x18] sm:$0xff] }
  0x8e   : > { %737 = vmatpush1.msra.mxu1 %v364_v33  ;;  %616 = vmatprep.subr.mxu0 %v491_v34  ;;  %v435_v27 = vld [vmem:[#allocation5 + $0x2f8] sm:$0xff]  ;;  %v342_v28 = vld [vmem:[#allocation5 + $0x10] sm:$0xff]  ;;  %v341_v30 = vld [vmem:[#allocation5 + $0x8] sm:$0xff] }
  0x8f   : > { %738 = vmatprep.subr.mxu1 %v363_v35  ;;  %617 = vmatpush2.msra.mxu0 %v490_v36  ;;  %v434_v29 = vld [vmem:[#allocation5 + $0x2f0] sm:$0xff]  ;;  %v433_v31 = vld [vmem:[#allocation5 + $0x2e8] sm:$0xff]  ;;  %v340_v32 = vld [vmem:[#allocation5] sm:$0xff] }
  0x90   : > { %739 = vmatpush1.msra.mxu1 %v362_v37  ;;  %618 = vmatprep.subr.mxu0 %v489_v38  ;;  %v432_v33 = vld [vmem:[#allocation5 + $0x2e0] sm:$0xff]  ;;  %v403_v34 = vld [vmem:[#allocation5 + $0x1f8] sm:$0xff]  ;;  %v402_v36 = vld [vmem:[#allocation5 + $0x1f0] sm:$0xff] }
  0x91   : > { %740 = vmatprep.subr.mxu1 %v361_v39  ;;  %619 = vmatpush2.msra.mxu0 %v488_v40  ;;  %v431_v35 = vld [vmem:[#allocation5 + $0x2d8] sm:$0xff]  ;;  %v430_v37 = vld [vmem:[#allocation5 + $0x2d0] sm:$0xff]  ;;  %v401_v38 = vld [vmem:[#allocation5 + $0x1e8] sm:$0xff] }
  0x92   : > { %741 = vmatpush1.msra.mxu1 %v360_v41  ;;  %620 = vmatprep.subr.mxu0 %v487_v42  ;;  %v429_v39 = vld [vmem:[#allocation5 + $0x2c8] sm:$0xff]  ;;  %v400_v40 = vld [vmem:[#allocation5 + $0x1e0] sm:$0xff]  ;;  %v399_v42 = vld [vmem:[#allocation5 + $0x1d8] sm:$0xff] }
  0x93   : > { %742 = vmatprep.subr.mxu1 %v359_v43  ;;  %621 = vmatpush2.msra.mxu0 %v486_v44  ;;  %v428_v41 = vld [vmem:[#allocation5 + $0x2c0] sm:$0xff]  ;;  %v427_v43 = vld [vmem:[#allocation5 + $0x2b8] sm:$0xff]  ;;  %v398_v44 = vld [vmem:[#allocation5 + $0x1d0] sm:$0xff] }
  0x94   : > { %743 = vmatpush1.msra.mxu1 %v358_v45  ;;  %622 = vmatprep.subr.mxu0 %v485_v46  ;;  %v426_v45 = vld [vmem:[#allocation5 + $0x2b0] sm:$0xff]  ;;  %v397_v46 = vld [vmem:[#allocation5 + $0x1c8] sm:$0xff]  ;;  %v387_v12 = vld [vmem:[#allocation5 + $0x178] sm:$0xff] }
  0x95   : > { %744 = vmatprep.subr.mxu1 %v357_v47  ;;  %623 = vmatpush2.msra.mxu0 %v484_v48  ;;  %v425_v47 = vld [vmem:[#allocation5 + $0x2a8] sm:$0xff]  ;;  %v396_v48 = vld [vmem:[#allocation5 + $0x1c0] sm:$0xff]  ;;  %v414_v16 = vld [vmem:[#allocation5 + $0x250] sm:$0xff] }
  0x96   : > { %745 = vmatpush1.msra.mxu1 %v356_v49  ;;  %624 = vmatprep.subr.mxu0 %v483_v50  ;;  %v424_v49 = vld [vmem:[#allocation5 + $0x2a0] sm:$0xff]  ;;  %v395_v50 = vld [vmem:[#allocation5 + $0x1b8] sm:$0xff] }
  0x97   : > { %746 = vmatprep.subr.mxu1 %v355_v51  ;;  %625 = vmatpush2.msra.mxu0 %v482_v52  ;;  %v423_v51 = vld [vmem:[#allocation5 + $0x298] sm:$0xff]  ;;  %v394_v52 = vld [vmem:[#allocation5 + $0x1b0] sm:$0xff] }
  0x98   : > { %747 = vmatpush1.msra.mxu1 %v354_v53  ;;  %626 = vmatprep.subr.mxu0 %v481_v54  ;;  %v422_v53 = vld [vmem:[#allocation5 + $0x290] sm:$0xff]  ;;  %v393_v54 = vld [vmem:[#allocation5 + $0x1a8] sm:$0xff] }
  0x99   : > { %748 = vmatprep.subr.mxu1 %v353_v55  ;;  %627 = vmatpush2.msra.mxu0 %v480_v56  ;;  %v421_v55 = vld [vmem:[#allocation5 + $0x288] sm:$0xff]  ;;  %v392_v56 = vld [vmem:[#allocation5 + $0x1a0] sm:$0xff] }
  0x9a   : > { %749 = vmatpush1.msra.mxu1 %v352_v57  ;;  %628 = vmatprep.subr.mxu0 %v479_v58  ;;  %v420_v57 = vld [vmem:[#allocation5 + $0x280] sm:$0xff]  ;;  %v391_v58 = vld [vmem:[#allocation5 + $0x198] sm:$0xff] }
  0x9b   : > { %750 = vmatprep.subr.mxu1 %v351_v59  ;;  %629 = vmatpush2.msra.mxu0 %v478_v60  ;;  %v419_v59 = vld [vmem:[#allocation5 + $0x278] sm:$0xff]  ;;  %v390_v60 = vld [vmem:[#allocation5 + $0x190] sm:$0xff] }
  0x9c   : > { %751 = vmatpush1.msra.mxu1 %v350_v3  ;;  %630 = vmatprep.subr.mxu0 %v477_v6  ;;  %v418_v3 = vld [vmem:[#allocation5 + $0x270] sm:$0xff]  ;;  %v389_v6 = vld [vmem:[#allocation5 + $0x188] sm:$0xff] }
  0x9d   : > { %752 = vmatprep.subr.mxu1 %v349_v8  ;;  %631 = vmatpush2.msra.mxu0 %v476_v9  ;;  %v417_v8 = vld [vmem:[#allocation5 + $0x268] sm:$0xff]  ;;  %v388_v9 = vld [vmem:[#allocation5 + $0x180] sm:$0xff] }
  0x9e   : > { %753 = vmatpush1.msra.mxu1 %v348_v10  ;;  %632 = vmatprep.subr.mxu0 %v475_v14  ;;  %v416_v10 = vld [vmem:[#allocation5 + $0x260] sm:$0xff]  ;;  %v415_v14 = vld [vmem:[#allocation5 + $0x258] sm:$0xff] }
  0x9f   : > { %754 = vmatprep.subr.mxu1 %v347_v15  ;;  %633 = vmatpush2.msra.mxu0 %v474_v18  ;;  %v386_v15 = vld [vmem:[#allocation5 + $0x170] sm:$0xff]  ;;  %v385_v18 = vld [vmem:[#allocation5 + $0x168] sm:$0xff] }
  0xa0   : > { %755 = vmatpush1.msra.mxu1 %v346_v19  ;;  %634 = vmatprep.subr.mxu0 %v473_v20  ;;  %v413_v19 = vld [vmem:[#allocation5 + $0x248] sm:$0xff]  ;;  %v384_v20 = vld [vmem:[#allocation5 + $0x160] sm:$0xff] }
  0xa1   : > { %756 = vmatprep.subr.mxu1 %v345_v21  ;;  %635 = vmatpush2.msra.mxu0 %v472_v22  ;;  %v412_v21 = vld [vmem:[#allocation5 + $0x240] sm:$0xff]  ;;  %v383_v22 = vld [vmem:[#allocation5 + $0x158] sm:$0xff] }
  0xa2   : > { %636 = vmatprep.mubr.f32.mxu0 %v554_v23  ;;  %757 = vmatpush1.msra.mxu1 %v344_v24  ;;  %v411_v23 = vld [vmem:[#allocation5 + $0x238] sm:$0xff]  ;;  %v382_v24 = vld [vmem:[#allocation5 + $0x150] sm:$0xff] }
  0xa3   : > { %637 = vmatmul.mubr.f32.vlgmr.msra.gmra.mxu0 %v551_v25  ;;  %758 = vmatprep.subr.mxu1 %v343_v26  ;;  %v410_v25 = vld [vmem:[#allocation5 + $0x230] sm:$0xff]  ;;  %v381_v26 = vld [vmem:[#allocation5 + $0x148] sm:$0xff] }
  0xa4   : > { %807 = vmatprep.subr.mxu0 %v435_v27  ;;  %759 = vmatpush1.msra.mxu1 %v342_v28  ;;  %v409_v27 = vld [vmem:[#allocation5 + $0x228] sm:$0xff]  ;;  %v380_v28 = vld [vmem:[#allocation5 + $0x140] sm:$0xff] }
  0xa5   : > { %808 = vmatpush1.msra.mxu0 %v434_v29  ;;  %760 = vmatprep.subr.mxu1 %v341_v30  ;;  %v408_v29 = vld [vmem:[#allocation5 + $0x220] sm:$0xff]  ;;  %v379_v30 = vld [vmem:[#allocation5 + $0x138] sm:$0xff] }
  0xa6   : > { %809 = vmatprep.subr.mxu0 %v433_v31  ;;  %761 = vmatpush1.msra.mxu1 %v340_v32  ;;  %v407_v31 = vld [vmem:[#allocation5 + $0x218] sm:$0xff]  ;;  %v378_v32 = vld [vmem:[#allocation5 + $0x130] sm:$0xff] }
  0xa7   : > { %810 = vmatpush1.msra.mxu0 %v432_v33  ;;  %762 = vmatprep.subr.mxu1 %v403_v34  ;;  %v406_v33 = vld [vmem:[#allocation5 + $0x210] sm:$0xff]  ;;  %v377_v34 = vld [vmem:[#allocation5 + $0x128] sm:$0xff] }
  0xa8   : > { %811 = vmatprep.subr.mxu0 %v431_v35  ;;  %763 = vmatpush2.msra.mxu1 %v402_v36  ;;  %v405_v35 = vld [vmem:[#allocation5 + $0x208] sm:$0xff]  ;;  %v376_v36 = vld [vmem:[#allocation5 + $0x120] sm:$0xff] }
  0xa9   : > { %812 = vmatpush1.msra.mxu0 %v430_v37  ;;  %764 = vmatprep.subr.mxu1 %v401_v38  ;;  %v404_v37 = vld [vmem:[#allocation5 + $0x200] sm:$0xff]  ;;  %v375_v38 = vld [vmem:[#allocation5 + $0x118] sm:$0xff] }
  0xaa   : > { %813 = vmatprep.subr.mxu0 %v429_v39  ;;  %765 = vmatpush2.msra.mxu1 %v400_v40  ;;  %v439_v39 = vld [vmem:[#allocation5 + $0x318] sm:$0xff]  ;;  %v438_v40 = vld [vmem:[#allocation5 + $0x310] sm:$0xff] }
  0xab   : > { %814 = vmatpush1.msra.mxu0 %v428_v41  ;;  %766 = vmatprep.subr.mxu1 %v399_v42  ;;  %v437_v41 = vld [vmem:[#allocation5 + $0x308] sm:$0xff]  ;;  %v372_v42 = vld [vmem:[#allocation5 + $0x100] sm:$0xff] }
  0xac   : > { %815 = vmatprep.subr.mxu0 %v427_v43  ;;  %767 = vmatpush2.msra.mxu1 %v398_v44  ;;  %v436_v43 = vld [vmem:[#allocation5 + $0x300] sm:$0xff]  ;;  %v918_v44 = vld [vmem:[#allocation9 + $0xe8] sm:$0xff] }
  0xad   : > { %816 = vmatpush1.msra.mxu0 %v426_v45  ;;  %768 = vmatprep.subr.mxu1 %v397_v46  ;;  %v917_v45 = vld [vmem:[#allocation9 + $0xe0] sm:$0xff]  ;;  %v912_v46 = vld [vmem:[#allocation9 + $0xb8] sm:$0xff] }
  0xae   : > { %817 = vmatprep.subr.mxu0 %v425_v47  ;;  %769 = vmatpush2.msra.mxu1 %v396_v48  ;;  %v1054_v47 = vld [vmem:[#allocation9 + $0x278] sm:$0xff]  ;;  %v911_v48 = vld [vmem:[#allocation9 + $0xb0] sm:$0xff] }
  0xaf   : > { %818 = vmatpush1.msra.mxu0 %v424_v49  ;;  %770 = vmatprep.subr.mxu1 %v395_v50  ;;  %v1052_v49 = vld [vmem:[#allocation9 + $0x268] sm:$0xff]  ;;  %v909_v50 = vld [vmem:[#allocation9 + $0xa0] sm:$0xff] }
  0xb0   : > { %819 = vmatprep.subr.mxu0 %v423_v51  ;;  %771 = vmatpush2.msra.mxu1 %v394_v52  ;;  %v1051_v51 = vld [vmem:[#allocation9 + $0x260] sm:$0xff]  ;;  %v908_v52 = vld [vmem:[#allocation9 + $0x98] sm:$0xff] }
  0xb1   : > { %820 = vmatpush1.msra.mxu0 %v422_v53  ;;  %772 = vmatprep.subr.mxu1 %v393_v54  ;;  %v1050_v53 = vld [vmem:[#allocation9 + $0x258] sm:$0xff]  ;;  %v907_v54 = vld [vmem:[#allocation9 + $0x90] sm:$0xff] }
  0xb2   : > { %821 = vmatprep.subr.mxu0 %v421_v55  ;;  %773 = vmatpush2.msra.mxu1 %v392_v56  ;;  %v1049_v55 = vld [vmem:[#allocation9 + $0x250] sm:$0xff]  ;;  %v906_v56 = vld [vmem:[#allocation9 + $0x88] sm:$0xff] }
  0xb3   : > { %822 = vmatpush1.msra.mxu0 %v420_v57  ;;  %774 = vmatprep.subr.mxu1 %v391_v58  ;;  %v1048_v57 = vld [vmem:[#allocation9 + $0x248] sm:$0xff]  ;;  %v905_v58 = vld [vmem:[#allocation9 + $0x80] sm:$0xff] }
  0xb4   : > { %823 = vmatprep.subr.mxu0 %v419_v59  ;;  %775 = vmatpush2.msra.mxu1 %v390_v60  ;;  %v1047_v59 = vld [vmem:[#allocation9 + $0x240] sm:$0xff]  ;;  %v904_v60 = vld [vmem:[#allocation9 + $0x78] sm:$0xff] }
  0xb5   : > { %824 = vmatpush1.msra.mxu0 %v418_v3  ;;  %776 = vmatprep.subr.mxu1 %v389_v6  ;;  %v1046_v3 = vld [vmem:[#allocation9 + $0x238] sm:$0xff]  ;;  %v903_v6 = vld [vmem:[#allocation9 + $0x70] sm:$0xff] }
  0xb6   : > { %825 = vmatprep.subr.mxu0 %v417_v8  ;;  %777 = vmatpush2.msra.mxu1 %v388_v9  ;;  %v1045_v8 = vld [vmem:[#allocation9 + $0x230] sm:$0xff]  ;;  %v902_v9 = vld [vmem:[#allocation9 + $0x68] sm:$0xff] }
  0xb7   : > { %826 = vmatpush1.msra.mxu0 %v416_v10  ;;  %778 = vmatprep.subr.mxu1 %v387_v12  ;;  %v1044_v10 = vld [vmem:[#allocation9 + $0x228] sm:$0xff]  ;;  %v901_v12 = vld [vmem:[#allocation9 + $0x60] sm:$0xff] }
  0xb8   : > { %827 = vmatprep.subr.mxu0 %v415_v14  ;;  %779 = vmatpush2.msra.mxu1 %v386_v15  ;;  %v1043_v14 = vld [vmem:[#allocation9 + $0x220] sm:$0xff]  ;;  %v900_v15 = vld [vmem:[#allocation9 + $0x58] sm:$0xff] }
  0xb9   : > { %828 = vmatpush1.msra.mxu0 %v414_v16  ;;  %780 = vmatprep.subr.mxu1 %v385_v18  ;;  %v1042_v16 = vld [vmem:[#allocation9 + $0x218] sm:$0xff]  ;;  %v899_v18 = vld [vmem:[#allocation9 + $0x50] sm:$0xff] }
  0xba   : > { %829 = vmatprep.subr.mxu0 %v413_v19  ;;  %781 = vmatpush2.msra.mxu1 %v384_v20  ;;  %v1041_v19 = vld [vmem:[#allocation9 + $0x210] sm:$0xff]  ;;  %v898_v20 = vld [vmem:[#allocation9 + $0x48] sm:$0xff] }
  0xbb   : > { %830 = vmatpush1.msra.mxu0 %v412_v21  ;;  %782 = vmatprep.subr.mxu1 %v383_v22  ;;  %v1040_v21 = vld [vmem:[#allocation9 + $0x208] sm:$0xff]  ;;  %v897_v22 = vld [vmem:[#allocation9 + $0x40] sm:$0xff] }
  0xbc   : > { %831 = vmatprep.subr.mxu0 %v411_v23  ;;  %783 = vmatpush2.msra.mxu1 %v382_v24  ;;  %v1039_v23 = vld [vmem:[#allocation9 + $0x200] sm:$0xff]  ;;  %v896_v24 = vld [vmem:[#allocation9 + $0x38] sm:$0xff] }
  0xbd   : > { %832 = vmatpush1.msra.mxu0 %v410_v25  ;;  %784 = vmatprep.subr.mxu1 %v381_v26  ;;  %v1038_v25 = vld [vmem:[#allocation9 + $0x1f8] sm:$0xff]  ;;  %v895_v26 = vld [vmem:[#allocation9 + $0x30] sm:$0xff] }
  0xbe   : > { %833 = vmatprep.subr.mxu0 %v409_v27  ;;  %785 = vmatpush2.msra.mxu1 %v380_v28  ;;  %v1037_v27 = vld [vmem:[#allocation9 + $0x1f0] sm:$0xff]  ;;  %v894_v28 = vld [vmem:[#allocation9 + $0x28] sm:$0xff] }
  0xbf   : > { %834 = vmatpush1.msra.mxu0 %v408_v29  ;;  %786 = vmatprep.subr.mxu1 %v379_v30  ;;  %v1036_v29 = vld [vmem:[#allocation9 + $0x1e8] sm:$0xff]  ;;  %v893_v30 = vld [vmem:[#allocation9 + $0x20] sm:$0xff] }
  0xc0   : > { %835 = vmatprep.subr.mxu0 %v407_v31  ;;  %642 = vmatprep.mubr.f32.mxu0 %v553_v13  ;;  %v374_v13 = vld [vmem:[#allocation5 + $0x110] sm:$0xff]  ;;  %v1035_v31 = vld [vmem:[#allocation9 + $0x1e0] sm:$0xff] }
  0xc1   : > { %2033 = vmatprep.mubr.msk.f32.mxu1 %vm567_vm1, %v559_v7  ;;  %787 = vmatpush2.msra.mxu1 %v378_v32  ;;  %v373_v7 = vld [vmem:[#allocation5 + $0x108] sm:$0xff]  ;;  %v892_v32 = vld [vmem:[#allocation9 + $0x18] sm:$0xff] }
  0xc2   : > { %836 = vmatpush1.msra.mxu0 %v406_v33  ;;  %720 = vmatmul.mubr.f32.gmra.mxu1 %v556_v11  ;;  %v920_v11 = vld [vmem:[#allocation9 + $0xf8] sm:$0xff] }
  0xc3   : > { %643 = vmatmul.mubr.f32.gmra.mxu0 %v550_v17  ;;  %788 = vmatprep.subr.mxu1 %v377_v34  ;;  %v919_v17 = vld [vmem:[#allocation9 + $0xf0] sm:$0xff]  ;;  %v1034_v33 = vld [vmem:[#allocation9 + $0x1d8] sm:$0xff] }
  0xc4   : > { %837 = vmatprep.subr.mxu0 %v405_v35  ;;  %789 = vmatpush2.msra.mxu1 %v376_v36  ;;  %v891_v34 = vld [vmem:[#allocation9 + $0x10] sm:$0xff]  ;;  %v890_v36 = vld [vmem:[#allocation9 + $0x8] sm:$0xff] }
  0xc5   : > { %838 = vmatpush1.msra.mxu0 %v404_v37  ;;  %790 = vmatprep.subr.mxu1 %v375_v38  ;;  %v1033_v35 = vld [vmem:[#allocation9 + $0x1d0] sm:$0xff]  ;;  %v1032_v37 = vld [vmem:[#allocation9 + $0x1c8] sm:$0xff]  ;;  %v889_v38 = vld [vmem:[#allocation9] sm:$0xff] }
  0xc6   : > { %867 = vmatprep.subr.mxu0 %v439_v39  ;;  %791 = vmatpush2.msra.mxu1 %v374_v13  ;;  %v1031_v39 = vld [vmem:[#allocation9 + $0x1c0] sm:$0xff]  ;;  %v938_v13 = vld [vmem:[#allocation9 + $0x188] sm:$0xff] }
  0xc7   : > { %868 = vmatpush2.msra.mxu0 %v438_v40  ;;  %792 = vmatprep.subr.mxu1 %v373_v7  ;;  %v1030_v40 = vld [vmem:[#allocation9 + $0x1b8] sm:$0xff]  ;;  %v937_v7 = vld [vmem:[#allocation9 + $0x180] sm:$0xff] }
  0xc8   : > { %869 = vmatprep.subr.mxu0 %v437_v41  ;;  %793 = vmatpush2.msra.mxu1 %v372_v42  ;;  %v1029_v41 = vld [vmem:[#allocation9 + $0x1b0] sm:$0xff]  ;;  %v936_v42 = vld [vmem:[#allocation9 + $0x178] sm:$0xff] }
  0xc9   : > { %794 = vmatprep.mubr.f32.mxu1 %v2543_v63  ;;  %870 = vmatpush2.msra.mxu0 %v436_v43  ;;  %v915_v63 = vld [vmem:[#allocation9 + $0xd0] sm:$0xff]  ;;  %v1028_v43 = vld [vmem:[#allocation9 + $0x1a8] sm:$0xff] }
  0xca   : > { %2034 = vmatprep.mubr.msk.f32.mxu0 %vm567_vm1, %v2520_v61  ;;  %795 = vmatmul.mubr.f32.vlgmr.msra.gmra.mxu1 %v2549_v4  ;;  %v916_v61 = vld [vmem:[#allocation9 + $0xd8] sm:$0xff]  ;;  %v1056_v4 = vld [vmem:[#allocation9 + $0x288] sm:$0xff] }
  0xcb   : > { %872 = vmatmul.mubr.f32.vlgmr.msra.gmra.mxu0 %v2526_v0  ;;  %800 = vmatprep.mubr.f32.mxu1 %v2546_v2  ;;  %v914_v0 = vld [vmem:[#allocation9 + $0xc8] sm:$0xff]  ;;  %v913_v2 = vld [vmem:[#allocation9 + $0xc0] sm:$0xff] }
  0xcc   : > { %2035 = vmatprep.mubr.msk.f32.mxu0 %vm567_vm1, %v2523_v62  ;;  %943 = vmatprep.subr.mxu0 %v920_v11  ;;  %v1055_v62 = vld [vmem:[#allocation9 + $0x280] sm:$0xff]  ;;  %v935_v11 = vld [vmem:[#allocation9 + $0x170] sm:$0xff] }
  0xcd   : > { %944 = vmatpush1.msra.mxu0 %v919_v17  ;;  %1082 = vmatprep.subr.mxu1 %v1056_v4  ;;  %v1027_v17 = vld [vmem:[#allocation9 + $0x1a0] sm:$0xff]  ;;  %v1074_v4 = vld [vmem:[#allocation9 + $0x318] sm:$0xff] }
  0xce   : > { %801 = vmatmul.mubr.f32.gmra.mxu1 %v2552_v5  ;;  %945 = vmatprep.subr.mxu0 %v918_v44  ;;  %v910_v5 = vld [vmem:[#allocation9 + $0xa8] sm:$0xff] }
  0xcf   : > { %878 = vmatmul.mubr.f32.gmra.mxu0 %v2529_v1  ;;  %1083 = vmatpush1.msra.mxu1 %v1055_v62  ;;  %v1053_v1 = vld [vmem:[#allocation9 + $0x270] sm:$0xff]  ;;  %v934_v44 = vld [vmem:[#allocation9 + $0x168] sm:$0xff] }
  0xd0   : > { %946 = vmatpush1.msra.mxu0 %v917_v45  ;;  %1084 = vmatprep.subr.mxu1 %v1054_v47  ;;  %v1026_v45 = vld [vmem:[#allocation9 + $0x198] sm:$0xff]  ;;  %v1073_v62 = vld [vmem:[#allocation9 + $0x310] sm:$0xff]  ;;  %v1072_v47 = vld [vmem:[#allocation9 + $0x308] sm:$0xff] }
  0xd1   : > { %947 = vmatprep.subr.mxu0 %v916_v61  ;;  %1085 = vmatpush1.msra.mxu1 %v1053_v1  ;;  %v933_v61 = vld [vmem:[#allocation9 + $0x160] sm:$0xff] }
  0xd2   : > { %948 = vmatpush1.msra.mxu0 %v915_v63  ;;  %1086 = vmatprep.subr.mxu1 %v1052_v49  ;;  %v1025_v63 = vld [vmem:[#allocation9 + $0x190] sm:$0xff]  ;;  %v1071_v1 = vld [vmem:[#allocation9 + $0x300] sm:$0xff]  ;;  %v1070_v49 = vld [vmem:[#allocation9 + $0x2f8] sm:$0xff] }
  0xd3   : > { %949 = vmatprep.subr.mxu0 %v914_v0  ;;  %1087 = vmatpush1.msra.mxu1 %v1051_v51  ;;  %v932_v0 = vld [vmem:[#allocation9 + $0x158] sm:$0xff]  ;;  %v1069_v51 = vld [vmem:[#allocation9 + $0x2f0] sm:$0xff] }
  0xd4   : > { %950 = vmatpush1.msra.mxu0 %v913_v2  ;;  %1088 = vmatprep.subr.mxu1 %v1050_v53  ;;  %v931_v2 = vld [vmem:[#allocation9 + $0x150] sm:$0xff]  ;;  %v1068_v53 = vld [vmem:[#allocation9 + $0x2e8] sm:$0xff] }
  0xd5   : > { %951 = vmatprep.subr.mxu0 %v912_v46  ;;  %1089 = vmatpush1.msra.mxu1 %v1049_v55  ;;  %v930_v46 = vld [vmem:[#allocation9 + $0x148] sm:$0xff]  ;;  %v1067_v55 = vld [vmem:[#allocation9 + $0x2e0] sm:$0xff] }
  0xd6   : > { %952 = vmatpush1.msra.mxu0 %v911_v48  ;;  %1090 = vmatprep.subr.mxu1 %v1048_v57  ;;  %v929_v48 = vld [vmem:[#allocation9 + $0x140] sm:$0xff]  ;;  %v1066_v57 = vld [vmem:[#allocation9 + $0x2d8] sm:$0xff] }
  0xd7   : > { %953 = vmatprep.subr.mxu0 %v910_v5  ;;  %1091 = vmatpush1.msra.mxu1 %v1047_v59  ;;  %v928_v5 = vld [vmem:[#allocation9 + $0x138] sm:$0xff]  ;;  %v1065_v59 = vld [vmem:[#allocation9 + $0x2d0] sm:$0xff] }
  0xd8   : > { %954 = vmatpush1.msra.mxu0 %v909_v50  ;;  %1092 = vmatprep.subr.mxu1 %v1046_v3  ;;  %v927_v50 = vld [vmem:[#allocation9 + $0x130] sm:$0xff]  ;;  %v1064_v3 = vld [vmem:[#allocation9 + $0x2c8] sm:$0xff] }
  0xd9   : > { %955 = vmatprep.subr.mxu0 %v908_v52  ;;  %1093 = vmatpush1.msra.mxu1 %v1045_v8  ;;  %v926_v52 = vld [vmem:[#allocation9 + $0x128] sm:$0xff]  ;;  %v1063_v8 = vld [vmem:[#allocation9 + $0x2c0] sm:$0xff] }
  0xda   : > { %956 = vmatpush1.msra.mxu0 %v907_v54  ;;  %1094 = vmatprep.subr.mxu1 %v1044_v10  ;;  %v925_v54 = vld [vmem:[#allocation9 + $0x120] sm:$0xff]  ;;  %v1061_v10 = vld [vmem:[#allocation9 + $0x2b0] sm:$0xff] }
  0xdb   : > { %957 = vmatprep.subr.mxu0 %v906_v56  ;;  %1095 = vmatpush1.msra.mxu1 %v1043_v14  ;;  %v924_v56 = vld [vmem:[#allocation9 + $0x118] sm:$0xff]  ;;  %v1059_v14 = vld [vmem:[#allocation9 + $0x2a0] sm:$0xff] }
  0xdc   : > { %958 = vmatpush1.msra.mxu0 %v905_v58  ;;  %1096 = vmatprep.subr.mxu1 %v1042_v16  ;;  %v923_v58 = vld [vmem:[#allocation9 + $0x110] sm:$0xff] }
  0xdd   : > { %959 = vmatprep.subr.mxu0 %v904_v60  ;;  %1097 = vmatpush1.msra.mxu1 %v1041_v19  ;;  %v922_v60 = vld [vmem:[#allocation9 + $0x108] sm:$0xff]  ;;  %v1057_v16 = vld [vmem:[#allocation9 + $0x290] sm:$0xff]  ;;  %v1390_v19 = vld [vmem:[#allocation10 + $0x518] sm:$0xff] }
  0xde   : > { %960 = vmatpush1.msra.mxu0 %v903_v6  ;;  %1098 = vmatprep.subr.mxu1 %v1040_v21  ;;  %v921_v6 = vld [vmem:[#allocation9 + $0x100] sm:$0xff] }
  0xdf   : > { %961 = vmatprep.subr.mxu0 %v902_v9  ;;  %1099 = vmatpush1.msra.mxu1 %v1039_v23  ;;  %v1062_v9 = vld [vmem:[#allocation9 + $0x2b8] sm:$0xff] }
  0xe0   : > { %962 = vmatpush1.msra.mxu0 %v901_v12  ;;  %1100 = vmatprep.subr.mxu1 %v1038_v25  ;;  %v1060_v12 = vld [vmem:[#allocation9 + $0x2a8] sm:$0xff] }
  0xe1   : > { %963 = vmatprep.subr.mxu0 %v900_v15  ;;  %1101 = vmatpush1.msra.mxu1 %v1037_v27  ;;  %v1058_v15 = vld [vmem:[#allocation9 + $0x298] sm:$0xff] }
  0xe2   : > { %964 = vmatpush1.msra.mxu0 %v899_v18  ;;  %1102 = vmatprep.subr.mxu1 %v1036_v29  ;;  %v1388_v18 = vld [vmem:[#allocation10 + $0x508] sm:$0xff] }
  0xe3   : > { %965 = vmatprep.subr.mxu0 %v898_v20  ;;  %1103 = vmatpush1.msra.mxu1 %v1035_v31 }
  0xe4   : > { %966 = vmatpush1.msra.mxu0 %v897_v22  ;;  %1104 = vmatprep.subr.mxu1 %v1034_v33 }
  0xe5   : > { %967 = vmatprep.subr.mxu0 %v896_v24  ;;  %1105 = vmatpush1.msra.mxu1 %v1033_v35 }
  0xe6   : > { %968 = vmatpush1.msra.mxu0 %v895_v26  ;;  %1106 = vmatprep.subr.mxu1 %v1032_v37 }
  0xe7   : > { %969 = vmatprep.subr.mxu0 %v894_v28  ;;  %1107 = vmatpush1.msra.mxu1 %v1031_v39 }
  0xe8   : > { %970 = vmatpush1.msra.mxu0 %v893_v30  ;;  %1108 = vmatprep.subr.mxu1 %v1030_v40 }
  0xe9   : > { %971 = vmatprep.subr.mxu0 %v892_v32  ;;  %1109 = vmatpush1.msra.mxu1 %v1029_v41 }
  0xea   : > { %972 = vmatpush1.msra.mxu0 %v891_v34  ;;  %1110 = vmatprep.subr.mxu1 %v1028_v43  ;;  %v1387_v43 = vld [vmem:[#allocation10 + $0x500] sm:$0xff] }
  0xeb   : > { %973 = vmatprep.subr.mxu0 %v890_v36  ;;  %1111 = vmatpush1.msra.mxu1 %v1027_v17 }
  0xec   : > { %974 = vmatpush1.msra.mxu0 %v889_v38  ;;  %1112 = vmatprep.subr.mxu1 %v1026_v45  ;;  %v1384_v45 = vld [vmem:[#allocation10 + $0x4e8] sm:$0xff] }
  0xed   : > { %989 = vmatprep.subr.mxu0 %v938_v13  ;;  %1113 = vmatpush1.msra.mxu1 %v1025_v63  ;;  %v1383_v63 = vld [vmem:[#allocation10 + $0x4e0] sm:$0xff] }
  0xee   : > { %990 = vmatpush2.msra.mxu0 %v937_v7  ;;  %1128 = vmatprep.subr.mxu1 %v1074_v4 }
  0xef   : > { %991 = vmatprep.subr.mxu0 %v936_v42  ;;  %1129 = vmatpush2.msra.mxu1 %v1073_v62  ;;  %v1379_v62 = vld [vmem:[#allocation10 + $0x4c0] sm:$0xff] }
  0xf0   : > { %992 = vmatpush2.msra.mxu0 %v935_v11  ;;  %1130 = vmatprep.subr.mxu1 %v1072_v47 }
  0xf1   : > { %993 = vmatprep.subr.mxu0 %v934_v44  ;;  %1131 = vmatpush2.msra.mxu1 %v1071_v1  ;;  %v1376_v1 = vld [vmem:[#allocation10 + $0x4a8] sm:$0xff] }
  0xf2   : > { %994 = vmatpush2.msra.mxu0 %v933_v61  ;;  %1132 = vmatprep.subr.mxu1 %v1070_v49  ;;  %v1389_v49 = vld [vmem:[#allocation10 + $0x510] sm:$0xff] }
  0xf3   : > { %995 = vmatprep.subr.mxu0 %v932_v0  ;;  %1133 = vmatpush2.msra.mxu1 %v1069_v51 }
  0xf4   : > { %996 = vmatpush2.msra.mxu0 %v931_v2  ;;  %1134 = vmatprep.subr.mxu1 %v1068_v53  ;;  %v1380_v2 = vld [vmem:[#allocation10 + $0x4c8] sm:$0xff] }
  0xf5   : > { %997 = vmatprep.subr.mxu0 %v930_v46  ;;  %1135 = vmatpush2.msra.mxu1 %v1067_v55  ;;  %v1372_v53 = vld [vmem:[#allocation10 + $0x488] sm:$0xff]  ;;  %v1371_v55 = vld [vmem:[#allocation10 + $0x480] sm:$0xff] }
  0xf6   : > { %998 = vmatpush2.msra.mxu0 %v929_v48  ;;  %1136 = vmatprep.subr.mxu1 %v1066_v57  ;;  %v1368_v57 = vld [vmem:[#allocation10 + $0x468] sm:$0xff] }
  0xf7   : > { %999 = vmatprep.subr.mxu0 %v928_v5  ;;  %1137 = vmatpush2.msra.mxu1 %v1065_v59  ;;  %v1367_v59 = vld [vmem:[#allocation10 + $0x460] sm:$0xff] }
  0xf8   : > { %1000 = vmatpush2.msra.mxu0 %v927_v50  ;;  %1138 = vmatprep.subr.mxu1 %v1064_v3  ;;  %v1375_v50 = vld [vmem:[#allocation10 + $0x4a0] sm:$0xff]  ;;  %v1364_v3 = vld [vmem:[#allocation10 + $0x448] sm:$0xff] }
  0xf9   : > { %1001 = vmatprep.subr.mxu0 %v926_v52  ;;  %1139 = vmatpush2.msra.mxu1 %v1063_v8  ;;  %v1386_v52 = vld [vmem:[#allocation10 + $0x4f8] sm:$0xff]  ;;  %v1363_v8 = vld [vmem:[#allocation10 + $0x440] sm:$0xff] }
  0xfa   : > { %1002 = vmatpush2.msra.mxu0 %v925_v54  ;;  %1140 = vmatprep.subr.mxu1 %v1062_v9  ;;  %v1385_v54 = vld [vmem:[#allocation10 + $0x4f0] sm:$0xff]  ;;  %v1374_v9 = vld [vmem:[#allocation10 + $0x498] sm:$0xff] }
  0xfb   : > { %1003 = vmatprep.subr.mxu0 %v924_v56  ;;  %1141 = vmatpush2.msra.mxu1 %v1061_v10  ;;  %v1382_v56 = vld [vmem:[#allocation10 + $0x4d8] sm:$0xff]  ;;  %v1360_v10 = vld [vmem:[#allocation10 + $0x428] sm:$0xff] }
  0xfc   : > { %1004 = vmatpush2.msra.mxu0 %v923_v58  ;;  %1142 = vmatprep.subr.mxu1 %v1060_v12  ;;  %v1381_v58 = vld [vmem:[#allocation10 + $0x4d0] sm:$0xff] }
  0xfd   : > { %1005 = vmatprep.subr.mxu0 %v922_v60  ;;  %1143 = vmatpush2.msra.mxu1 %v1059_v14  ;;  %v1378_v60 = vld [vmem:[#allocation10 + $0x4b8] sm:$0xff]  ;;  %v1373_v12 = vld [vmem:[#allocation10 + $0x490] sm:$0xff]  ;;  %v1359_v14 = vld [vmem:[#allocation10 + $0x420] sm:$0xff] }
  0xfe   : > { %1006 = vmatpush2.msra.mxu0 %v921_v6  ;;  %1144 = vmatprep.subr.mxu1 %v1058_v15  ;;  %v1377_v6 = vld [vmem:[#allocation10 + $0x4b0] sm:$0xff]  ;;  %v1370_v15 = vld [vmem:[#allocation10 + $0x478] sm:$0xff] }
  0xff   : > { %1145 = vmatpush2.msra.mxu1 %v1057_v16  ;;  %1443 = vmatprep.subr.mxu0 %v1388_v18  ;;  %v1356_v16 = vld [vmem:[#allocation10 + $0x408] sm:$0xff]  ;;  %v1369_v18 = vld [vmem:[#allocation10 + $0x470] sm:$0xff] }
 0x100   : > { %1520 = vmatprep.subr.mxu1 %v1390_v19  ;;  %v1355_v19 = vld [vmem:[#allocation10 + $0x400] sm:$0xff] }
 0x146   : > { %v715_v20 = vpop.f32.mrf.mxu1 }
 0x148   : > { %v717_v22 = vpop.f32.mrf.mxu1 }
 0x163   : > { %v638_v21 = vpop.f32.mrf.mxu0 }
 0x164   : > { %v716_v28 = vadd.f32 %v715_v20, %v638_v21  ;;  %v1366_v20 = vld [vmem:[#allocation10 + $0x458] sm:$0xff]  ;;  %v1352_v21 = vld [vmem:[#allocation10 + $0x3e8] sm:$0xff] }
 0x165   : > { %v640_v23 = vpop.f32.mrf.mxu0 }
 0x166   : > { %v718_v31 = vadd.f32 %v717_v22, %v640_v23  ;;  %v1365_v22 = vld [vmem:[#allocation10 + $0x450] sm:$0xff]  ;;  %v1351_v23 = vld [vmem:[#allocation10 + $0x3e0] sm:$0xff] }
 0x182   : > { %v721_v25 = vpop.f32.mrf.mxu1 }
 0x183   : > { %v644_v24 = vpop.f32.mrf.mxu0 }
 0x184   : > { %v723_v27 = vpop.f32.mrf.mxu1  ;;  %v722_v35 = vadd.f32 %v721_v25, %v644_v24  ;;  %v1362_v24 = vld [vmem:[#allocation10 + $0x438] sm:$0xff]  ;;  %v1348_v25 = vld [vmem:[#allocation10 + $0x3c8] sm:$0xff] }
 0x185   : > { %v646_v26 = vpop.f32.mrf.mxu0 }
 0x186   : > { %v724_v13 = vadd.f32 %v723_v27, %v646_v26  ;;  %v1361_v26 = vld [vmem:[#allocation10 + $0x430] sm:$0xff]  ;;  %v1347_v27 = vld [vmem:[#allocation10 + $0x3c0] sm:$0xff] }
 0x18a   : > { %v796_v29 = vpop.f32.mrf.mxu1 }
 0x18b   : > { %v873_v30 = vpop.f32.mrf.mxu0  ;;  %v797_v32 = vadd.f32 %v796_v29, %v716_v28  ;;  %v1358_v28 = vld [vmem:[#allocation10 + $0x418] sm:$0xff]  ;;  %v1344_v29 = vld [vmem:[#allocation10 + $0x3a8] sm:$0xff] }
 0x18c   : > { %v798_v33 = vpop.f32.mrf.mxu1 }
 0x18d   : > { %v875_v34 = vpop.f32.mrf.mxu0  ;;  %v2583_v36 = vadd.f32 %v873_v30, %v797_v32  ;;  %v799_v37 = vadd.f32 %v798_v33, %v718_v31  ;;  %v1357_v30 = vld [vmem:[#allocation10 + $0x410] sm:$0xff]  ;;  %v1354_v31 = vld [vmem:[#allocation10 + $0x3f8] sm:$0xff] }
 0x18e   : > { %v802_v38 = vpop.f32.mrf.mxu1  ;;  %v1353_v32 = vld [vmem:[#allocation10 + $0x3f0] sm:$0xff]  ;;  %v1350_v33 = vld [vmem:[#allocation10 + $0x3d8] sm:$0xff] }
 0x18f   : > { %v879_v39 = vpop.f32.mrf.mxu0  ;;  %v1182_v40 = vrot.slane %v2583_v36, 7  ;;  %v876_v7 = vadd.f32 %v875_v34, %v799_v37  ;;  %v803_v41 = vadd.f32 %v802_v38, %v722_v35  ;;  %v1349_v34 = vld [vmem:[#allocation10 + $0x3d0] sm:$0xff]  ;;  %v1346_v35 = vld [vmem:[#allocation10 + $0x3b8] sm:$0xff]  ;;  %v1343_v37 = vld [vmem:[#allocation10 + $0x3a0] sm:$0xff] }
 0x190   : > { %v804_v42 = vpop.f32.mrf.mxu1  ;;  %v1345_v38 = vld [vmem:[#allocation10 + $0x3b0] sm:$0xff] }
 0x191   : > { %1192 = vst [vmem:[#allocation2] sm:$0xfe] %v1182_v40  ;;  %v1183_v11 = vrot.slane %v876_v7, 7  ;;  %v880_v17 = vadd.f32 %v879_v39, %v803_v41  ;;  %v805_v44 = vadd.f32 %v804_v42, %v724_v13  ;;  %2036 = vmatprep.mubr.msk.f32.mxu0 %vm939_vm2, %v876_v7  ;;  %v881_v61 = vpop.f32.mrf.mxu0  ;;  %v1340_v39 = vld [vmem:[#allocation10 + $0x388] sm:$0xff]  ;;  %v1342_v13 = vld [vmem:[#allocation10 + $0x398] sm:$0xff]  ;;  %v1341_v7 = vld [vmem:[#allocation10 + $0x390] sm:$0xff] }
 0x192   : > { %1008 = vmatmul.mubr.f32.vlgmr.msra.gmra.mxu0 %v2583_v36  ;;  %v1336_v41 = vld [vmem:[#allocation10 + $0x368] sm:$0xff]  ;;  %v1338_v42 = vld [vmem:[#allocation10 + $0x378] sm:$0xff] }
 0x193   : > { %1194 = vst.msk [vmem:[#allocation2 + $0x8] sm:$0xfe] %vm1193_vm3, %v1183_v11  ;;  %v1184_v0 = vrot.slane %v880_v17, 7  ;;  %v2588_v4 = vadd.f32 %v881_v61, %v805_v44  ;;  %1444 = vmatpush1.msra.mxu0 %v1387_v43  ;;  %v1077_v5 = vrot.slane %v880_v17, 1  ;;  %v1335_v43 = vld [vmem:[#allocation10 + $0x360] sm:$0xff]  ;;  %v1332_v17 = vld [vmem:[#allocation10 + $0x348] sm:$0xff] }
 0x194   : > { %1445 = vmatprep.subr.mxu0 %v1384_v45  ;;  %v1334_v44 = vld [vmem:[#allocation10 + $0x358] sm:$0xff]  ;;  %v1331_v45 = vld [vmem:[#allocation10 + $0x340] sm:$0xff]  ;;  %v1333_v61 = vld [vmem:[#allocation10 + $0x350] sm:$0xff] }
 0x195   : > { %v1185_v46 = vsel %vm1181_vm4, %v1182_v40, %v1184_v0  ;;  %v1078_v47 = vrot.slane %v2588_v4, 1  ;;  %v1186_v48 = vrot.slane %v2588_v4, 7  ;;  %1446 = vmatpush1.msra.mxu0 %v1383_v63  ;;  %v1339_v40 = vld [vmem:[#allocation10 + $0x380] sm:$0xff]  ;;  %v1328_v63 = vld [vmem:[#allocation10 + $0x328] sm:$0xff]  ;;  %v1330_v0 = vld [vmem:[#allocation10 + $0x338] sm:$0xff] }
 0x196   : > { %1195 = vst [vmem:[#allocation2 + $0x10] sm:$0x7] %v1185_v46  ;;  %1447 = vmatprep.subr.mxu0 %v1380_v2  ;;  %v1327_v2 = vld [vmem:[#allocation10 + $0x320] sm:$0xff]  ;;  %v1424_v46 = vld [vmem:[#allocation10 + $0x628] sm:$0xff] }
 0x197   : > { %v1187_v51 = vsel %vm1181_vm4, %v1183_v11, %v1186_v48  ;;  %2037 = vmatprep.mubr.msk.f32.mxu1 %vm939_vm2, %v1078_v47  ;;  %1448 = vmatpush1.msra.mxu0 %v1379_v62  ;;  %v1337_v11 = vld [vmem:[#allocation10 + $0x370] sm:$0xff]  ;;  %v1426_v47 = vld [vmem:[#allocation10 + $0x638] sm:$0xff]  ;;  %v1423_v48 = vld [vmem:[#allocation10 + $0x620] sm:$0xff] }
 0x198   : > { %1197 = vst.msk [vmem:[#allocation2 + $0x18] sm:$0x7] %vm1196_vm5, %v1187_v51  ;;  %1147 = vmatmul.mubr.f32.vlgmr.msra.gmra.mxu1 %v1077_v5  ;;  %1449 = vmatprep.subr.mxu0 %v1376_v1  ;;  %v1329_v62 = vld [vmem:[#allocation10 + $0x330] sm:$0xff]  ;;  %v1420_v5 = vld [vmem:[#allocation10 + $0x608] sm:$0xff] }
 0x199   : > { %1521 = vmatpush1.msra.mxu1 %v1389_v49  ;;  %1450 = vmatpush1.msra.mxu0 %v1375_v50  ;;  %v1425_v1 = vld [vmem:[#allocation10 + $0x630] sm:$0xff]  ;;  %v1422_v49 = vld [vmem:[#allocation10 + $0x618] sm:$0xff]  ;;  %v1419_v50 = vld [vmem:[#allocation10 + $0x600] sm:$0xff] }
 0x19a   : > { %1522 = vmatprep.subr.mxu1 %v1386_v52  ;;  %1451 = vmatprep.subr.mxu0 %v1372_v53  ;;  %v1421_v51 = vld [vmem:[#allocation10 + $0x610] sm:$0xff]  ;;  %v1416_v52 = vld [vmem:[#allocation10 + $0x5e8] sm:$0xff]  ;;  %v1418_v53 = vld [vmem:[#allocation10 + $0x5f8] sm:$0xff] }
 0x19b   : > { %1523 = vmatpush1.msra.mxu1 %v1385_v54  ;;  %1452 = vmatpush1.msra.mxu0 %v1371_v55  ;;  %v1415_v54 = vld [vmem:[#allocation10 + $0x5e0] sm:$0xff]  ;;  %v1417_v55 = vld [vmem:[#allocation10 + $0x5f0] sm:$0xff] }
 0x19c   : > { %1524 = vmatprep.subr.mxu1 %v1382_v56  ;;  %1453 = vmatprep.subr.mxu0 %v1368_v57  ;;  %v1412_v56 = vld [vmem:[#allocation10 + $0x5c8] sm:$0xff]  ;;  %v1414_v57 = vld [vmem:[#allocation10 + $0x5d8] sm:$0xff] }
 0x19d   : > { %1525 = vmatpush1.msra.mxu1 %v1381_v58  ;;  %1454 = vmatpush1.msra.mxu0 %v1367_v59  ;;  %v1411_v58 = vld [vmem:[#allocation10 + $0x5c0] sm:$0xff]  ;;  %v1413_v59 = vld [vmem:[#allocation10 + $0x5d0] sm:$0xff] }
 0x19e   : > { %1526 = vmatprep.subr.mxu1 %v1378_v60  ;;  %1455 = vmatprep.subr.mxu0 %v1364_v3  ;;  %v1408_v60 = vld [vmem:[#allocation10 + $0x5a8] sm:$0xff]  ;;  %v1410_v3 = vld [vmem:[#allocation10 + $0x5b8] sm:$0xff] }
 0x19f   : > { %1527 = vmatpush1.msra.mxu1 %v1377_v6  ;;  %1456 = vmatpush1.msra.mxu0 %v1363_v8  ;;  %v1407_v6 = vld [vmem:[#allocation10 + $0x5a0] sm:$0xff]  ;;  %v1409_v8 = vld [vmem:[#allocation10 + $0x5b0] sm:$0xff] }
 0x1a0   : > { %1528 = vmatprep.subr.mxu1 %v1374_v9  ;;  %1457 = vmatprep.subr.mxu0 %v1360_v10  ;;  %v1404_v9 = vld [vmem:[#allocation10 + $0x588] sm:$0xff]  ;;  %v1406_v10 = vld [vmem:[#allocation10 + $0x598] sm:$0xff] }
 0x1a1   : > { %1529 = vmatpush1.msra.mxu1 %v1373_v12  ;;  %1458 = vmatpush1.msra.mxu0 %v1359_v14  ;;  %v1403_v12 = vld [vmem:[#allocation10 + $0x580] sm:$0xff]  ;;  %v1405_v14 = vld [vmem:[#allocation10 + $0x590] sm:$0xff] }
 0x1a2   : > { %1530 = vmatprep.subr.mxu1 %v1370_v15  ;;  %1459 = vmatprep.subr.mxu0 %v1356_v16  ;;  %v1400_v15 = vld [vmem:[#allocation10 + $0x568] sm:$0xff]  ;;  %v1402_v16 = vld [vmem:[#allocation10 + $0x578] sm:$0xff] }
 0x1a3   : > { %1531 = vmatpush1.msra.mxu1 %v1369_v18  ;;  %1460 = vmatpush1.msra.mxu0 %v1355_v19  ;;  %v1399_v18 = vld [vmem:[#allocation10 + $0x560] sm:$0xff]  ;;  %v1401_v19 = vld [vmem:[#allocation10 + $0x570] sm:$0xff] }
 0x1a4   : > { %1532 = vmatprep.subr.mxu1 %v1366_v20  ;;  %1461 = vmatprep.subr.mxu0 %v1352_v21  ;;  %v1396_v20 = vld [vmem:[#allocation10 + $0x548] sm:$0xff]  ;;  %v1398_v21 = vld [vmem:[#allocation10 + $0x558] sm:$0xff] }
 0x1a5   : > { %1533 = vmatpush1.msra.mxu1 %v1365_v22  ;;  %1462 = vmatpush1.msra.mxu0 %v1351_v23  ;;  %v1395_v22 = vld [vmem:[#allocation10 + $0x540] sm:$0xff]  ;;  %v1397_v23 = vld [vmem:[#allocation10 + $0x550] sm:$0xff] }
 0x1a6   : > { %1534 = vmatprep.subr.mxu1 %v1362_v24  ;;  %1463 = vmatprep.subr.mxu0 %v1348_v25  ;;  %v1392_v24 = vld [vmem:[#allocation10 + $0x528] sm:$0xff]  ;;  %v1394_v25 = vld [vmem:[#allocation10 + $0x538] sm:$0xff] }
 0x1a7   : > { %1535 = vmatpush1.msra.mxu1 %v1361_v26  ;;  %1464 = vmatpush1.msra.mxu0 %v1347_v27  ;;  %v1391_v26 = vld [vmem:[#allocation10 + $0x520] sm:$0xff]  ;;  %v1393_v27 = vld [vmem:[#allocation10 + $0x530] sm:$0xff] }
 0x1a8   : > { %1536 = vmatprep.subr.mxu1 %v1358_v28  ;;  %1465 = vmatprep.subr.mxu0 %v1344_v29  ;;  %v1284_v28 = vld [vmem:[#allocation10 + $0x1e8] sm:$0xff]  ;;  %v1286_v29 = vld [vmem:[#allocation10 + $0x1f8] sm:$0xff] }
 0x1a9   : > { %1537 = vmatpush1.msra.mxu1 %v1357_v30  ;;  %1466 = vmatpush1.msra.mxu0 %v1343_v37  ;;  %v884_v30 = vlaneseq }
 0x1aa   : > { %1538 = vmatprep.subr.mxu1 %v1354_v31  ;;  %1467 = vmatprep.subr.mxu0 %v1340_v39  ;;  %v2366_v31 = vmov 1966171168  }
 0x1ab   : > { %1539 = vmatpush1.msra.mxu1 %v1353_v32  ;;  %1468 = vmatpush1.msra.mxu0 %v1339_v40  ;;  %v1159_v32 = vunpack.c.l.s4 %v2366_v31  ;;  %vm1176_vm8 = vcmp.lt.s32.totalorder %v884_v30, 200  ;;  %v1254_v31 = vld [vmem:[#allocation10 + $0xf8] sm:$0xff] }
 0x1ac   : > { %1540 = vmatprep.subr.mxu1 %v1350_v33  ;;  %1469 = vmatprep.subr.mxu0 %v1336_v41  ;;  %v2595_v33 = vand.u32 127, %v884_v30 }
 0x1ad   : > { %1541 = vmatpush1.msra.mxu1 %v1349_v34  ;;  %1470 = vmatpush1.msra.mxu0 %v1335_v43  ;;  %v1160_v34 = vunpack.c.0.s8 %v1159_v32  ;;  %v1251_v32 = vld [vmem:[#allocation10 + $0xe0] sm:$0xff] }
 0x1ae   : > { %1542 = vmatprep.subr.mxu1 %v1346_v35  ;;  %1471 = vmatprep.subr.mxu0 %v1332_v17  ;;  %v2597_v35 = vshrl.u32 %v884_v30, 7  ;;  %vm887_vm6 = vcmp.eq.s32.totalorder %v2595_v33, 0  ;;  %v1252_v30 = vld [vmem:[#allocation10 + $0xe8] sm:$0xff] }
 0x1af   : > { %1543 = vmatpush1.msra.mxu1 %v1345_v38  ;;  %1472 = vmatpush1.msra.mxu0 %v1331_v45 }
 0x1b0   : > { %1544 = vmatprep.subr.mxu1 %v1342_v13  ;;  %1473 = vmatprep.subr.mxu0 %v1328_v63  ;;  %v886_v13 = vadd.s32 128, %v2595_v33  ;;  %v1163_v41 = vsub.s32 %v1160_v34, %v2597_v35  ;;  %v1253_v34 = vld [vmem:[#allocation10 + $0xf0] sm:$0xff] }
 0x1b1   : > { %1545 = vmatpush1.msra.mxu1 %v1341_v7  ;;  %1474 = vmatpush1.msra.mxu0 %v1327_v2 }
 0x1b2   : > { %1546 = vmatprep.subr.mxu1 %v1338_v42  ;;  %1489 = vmatprep.subr.mxu0 %v1424_v46  ;;  %vm1023_vm7 = vcmp.eq.s32.totalorder %v886_v13, 199  ;;  %v1323_v46 = vld [vmem:[#allocation2] sm:$0xfe]  ;;  %v1249_v13 = vld [vmem:[#allocation10 + $0xd0] sm:$0xff] }
 0x1b3   : > { %1547 = vmatpush1.msra.mxu1 %v1337_v11  ;;  %1490 = vmatpush2.msra.mxu0 %v1423_v48 }
 0x1b4   : > { %1548 = vmatprep.subr.mxu1 %v1334_v44  ;;  %1491 = vmatprep.subr.mxu0 %v1420_v5  ;;  %v1431_v5 = vrot.slane %v1323_v46, 1  ;;  %v1231_v46 = vld [vmem:[#allocation10 + $0x40] sm:$0xff] }
 0x1b5   : > { %1549 = vmatpush1.msra.mxu1 %v1333_v61  ;;  %1492 = vmatpush2.msra.mxu0 %v1419_v50 }
 0x1b6   : > { %1550 = vmatprep.subr.mxu1 %v1330_v0  ;;  %1493 = vmatprep.subr.mxu0 %v1416_v52  ;;  %v1285_v52 = vld [vmem:[#allocation10 + $0x1f0] sm:$0xff] }
 0x1b7   : > { %1551 = vmatpush1.msra.mxu1 %v1329_v62  ;;  %1494 = vmatpush2.msra.mxu0 %v1415_v54  ;;  %v1324_v62 = vld [vmem:[#allocation2 + $0x8] sm:$0xfe]  ;;  %v1282_v54 = vld [vmem:[#allocation10 + $0x1d8] sm:$0xff] }
 0x1b8   : > { %1566 = vmatprep.subr.mxu1 %v1426_v47  ;;  %1495 = vmatprep.subr.mxu0 %v1412_v56  ;;  %v1434_v48 = vrot.slane %v1324_v62, 1  ;;  %v1281_v56 = vld [vmem:[#allocation10 + $0x1d0] sm:$0xff]  ;;  %v1234_v62 = vld [vmem:[#allocation10 + $0x58] sm:$0xff] }
 0x1b9   : > { %1567 = vmatpush2.msra.mxu1 %v1425_v1  ;;  %1496 = vmatpush2.msra.mxu0 %v1411_v58  ;;  %v1278_v58 = vld [vmem:[#allocation10 + $0x1b8] sm:$0xff] }
 0x1ba   : > { %1568 = vmatprep.subr.mxu1 %v1422_v49  ;;  %1497 = vmatprep.subr.mxu0 %v1408_v60  ;;  %v1277_v60 = vld [vmem:[#allocation10 + $0x1b0] sm:$0xff] }
 0x1bb   : > { %1569 = vmatpush2.msra.mxu1 %v1421_v51  ;;  %1498 = vmatpush2.msra.mxu0 %v1407_v6  ;;  %v1274_v6 = vld [vmem:[#allocation10 + $0x198] sm:$0xff] }
 0x1bc   : > { %1570 = vmatprep.subr.mxu1 %v1418_v53  ;;  %1499 = vmatprep.subr.mxu0 %v1404_v9  ;;  %v1280_v53 = vld [vmem:[#allocation10 + $0x1c8] sm:$0xff]  ;;  %v1271_v9 = vld [vmem:[#allocation10 + $0x180] sm:$0xff] }
 0x1bd   : > { %1571 = vmatpush2.msra.mxu1 %v1417_v55  ;;  %1500 = vmatpush2.msra.mxu0 %v1403_v12  ;;  %v1279_v55 = vld [vmem:[#allocation10 + $0x1c0] sm:$0xff]  ;;  %v1268_v12 = vld [vmem:[#allocation10 + $0x168] sm:$0xff] }
 0x1be   : > { %1572 = vmatprep.subr.mxu1 %v1414_v57  ;;  %1501 = vmatprep.subr.mxu0 %v1400_v15  ;;  %v1276_v57 = vld [vmem:[#allocation10 + $0x1a8] sm:$0xff]  ;;  %v1267_v15 = vld [vmem:[#allocation10 + $0x160] sm:$0xff] }
 0x1bf   : > { %1573 = vmatpush2.msra.mxu1 %v1413_v59  ;;  %1502 = vmatpush2.msra.mxu0 %v1399_v18  ;;  %v1275_v59 = vld [vmem:[#allocation10 + $0x1a0] sm:$0xff]  ;;  %v1264_v18 = vld [vmem:[#allocation10 + $0x148] sm:$0xff] }
 0x1c0   : > { %1574 = vmatprep.subr.mxu1 %v1410_v3  ;;  %1503 = vmatprep.subr.mxu0 %v1396_v20  ;;  %v1272_v3 = vld [vmem:[#allocation10 + $0x188] sm:$0xff]  ;;  %v1263_v20 = vld [vmem:[#allocation10 + $0x140] sm:$0xff] }
 0x1c1   : > { %1575 = vmatpush2.msra.mxu1 %v1409_v8  ;;  %1504 = vmatpush2.msra.mxu0 %v1395_v22  ;;  %v1260_v22 = vld [vmem:[#allocation10 + $0x128] sm:$0xff] }
 0x1c2   : > { %1576 = vmatprep.subr.mxu1 %v1406_v10  ;;  %1505 = vmatprep.subr.mxu0 %v1392_v24  ;;  %v1273_v10 = vld [vmem:[#allocation10 + $0x190] sm:$0xff]  ;;  %v1259_v24 = vld [vmem:[#allocation10 + $0x120] sm:$0xff] }
 0x1c3   : > { %1577 = vmatpush2.msra.mxu1 %v1405_v14  ;;  %1506 = vmatpush2.msra.mxu0 %v1391_v26  ;;  %v1270_v14 = vld [vmem:[#allocation10 + $0x178] sm:$0xff]  ;;  %v1256_v26 = vld [vmem:[#allocation10 + $0x108] sm:$0xff] }
 0x1c4   : > { %1578 = vmatprep.subr.mxu1 %v1402_v16  ;;  %1603 = vmatprep.subr.mxu0 %v1284_v28  ;;  %v1269_v16 = vld [vmem:[#allocation10 + $0x170] sm:$0xff]  ;;  %v1255_v28 = vld [vmem:[#allocation10 + $0x100] sm:$0xff] }
 0x1c5   : > { %1579 = vmatpush2.msra.mxu1 %v1401_v19  ;;  %v1266_v19 = vld [vmem:[#allocation10 + $0x158] sm:$0xff] }
 0x1c6   : > { %1580 = vmatprep.subr.mxu1 %v1398_v21  ;;  %v1265_v21 = vld [vmem:[#allocation10 + $0x150] sm:$0xff] }
 0x1c7   : > { %1581 = vmatpush2.msra.mxu1 %v1397_v23  ;;  %v1262_v23 = vld [vmem:[#allocation10 + $0x138] sm:$0xff] }
 0x1c8   : > { %1582 = vmatprep.subr.mxu1 %v1394_v25  ;;  %v1261_v25 = vld [vmem:[#allocation10 + $0x130] sm:$0xff] }
 0x1c9   : > { %1583 = vmatpush2.msra.mxu1 %v1393_v27  ;;  %v1258_v27 = vld [vmem:[#allocation10 + $0x118] sm:$0xff] }
 0x1ca   : > { %1680 = vmatprep.subr.mxu1 %v1286_v29  ;;  %v1257_v29 = vld [vmem:[#allocation10 + $0x110] sm:$0xff] }
 0x252   : > { %v1009_v37 = vpop.f32.mrf.mxu0 }
 0x253   : > { %v1016_v38 = vrot.slane %v1009_v37, 7  ;;  %v1248_v37 = vld [vmem:[#allocation10 + $0xc8] sm:$0xff] }
 0x254   : > { %v1011_v39 = vpop.f32.mrf.mxu0 }
 0x255   : > { %v1017_v40 = vrot.slane %v1011_v39, 7  ;;  %v1020_v7 = vsel %vm887_vm6, %v2583_v36, %v1016_v38  ;;  %v1250_v38 = vld [vmem:[#allocation10 + $0xd8] sm:$0xff]  ;;  %v1247_v39 = vld [vmem:[#allocation10 + $0xc0] sm:$0xff] }
 0x257   : > { %v1157_v42 = vcombine.low %v1020_v7, %v1017_v40  ;;  %v1244_v40 = vld [vmem:[#allocation10 + $0xa8] sm:$0xff]  ;;  %v1246_v7 = vld [vmem:[#allocation10 + $0xb8] sm:$0xff] }
 0x258   : > { %v1148_v43 = vpop.f32.mrf.mxu1 }
 0x259   : > { %v1164_v11 = vrot.slane %v1157_v42, %v1163_v41  ;;  %v1245_v42 = vld [vmem:[#allocation10 + $0xb0] sm:$0xff] }
 0x25a   : > { %v1150_v17 = vpop.f32.mrf.mxu1 }
 0x25b   : > { %v1165_v44 = vcombine.high %v1164_v11, %v1164_v11  ;;  %v1154_v45 = vsel %vm1023_vm7, %v2588_v4, %v1150_v17  ;;  %v1283_v4 = vld [vmem:[#allocation10 + $0x1e0] sm:$0xff]  ;;  %v1242_v11 = vld [vmem:[#allocation10 + $0x98] sm:$0xff] }
 0x25c   : > { %v1200_v61 = vcombine.low %v1148_v43, %v1154_v45  ;;  %v1240_v43 = vld [vmem:[#allocation10 + $0x88] sm:$0xff]  ;;  %v1239_v17 = vld [vmem:[#allocation10 + $0x80] sm:$0xff] }
 0x25d   : > { %v1172_v63 = vrot.slane %v1165_v44, %v1163_v41  ;;  %v1241_v44 = vld [vmem:[#allocation10 + $0x90] sm:$0xff]  ;;  %v1236_v45 = vld [vmem:[#allocation10 + $0x68] sm:$0xff] }
 0x25e   : > { %v1207_v0 = vrot.slane %v1200_v61, %v1163_v41  ;;  %v1238_v61 = vld [vmem:[#allocation10 + $0x78] sm:$0xff] }
 0x25f   : > { %1178 = vst.msk [vmem:[#allocation2] ss:$8 sm:$0x3] %vm1176_vm8, %v1172_v63  ;;  %v1235_v63 = vld [vmem:[#allocation10 + $0x60] sm:$0xff] }
 0x260   : > { %v1214_v2 = vrot.slane %v1207_v0, %v1163_v41  ;;  %v1243_v41 = vld [vmem:[#allocation10 + $0xa0] sm:$0xff]  ;;  %v1237_v0 = vld [vmem:[#allocation10 + $0x70] sm:$0xff] }
 0x262   : > { %1217 = vst.msk [vmem:[#allocation2 + $0x13] ss:$8 sm:$0x3] %vm1176_vm8, %v1214_v2  ;;  %v1232_v2 = vld [vmem:[#allocation10 + $0x48] sm:$0xff] }
 0x266   : > { %v1220_v8 = vld [vmem:[#allocation2 + $0x8] sm:$0xff] }
 0x269   : > { %v1326_v36 = vld [vmem:[#allocation2 + $0x18] sm:$0xf]  ;;  %v1325_v47 = vld [vmem:[#allocation2 + $0x10] sm:$0xf] }
 0x26a   : > { %v1435_v1 = vrot.slane %v1326_v36, 1  ;;  %v1432_v49 = vrot.slane %v1325_v47, 1  ;;  %v1233_v36 = vld [vmem:[#allocation10 + $0x50] sm:$0xff]  ;;  %v1228_v47 = vld [vmem:[#allocation10 + $0x28] sm:$0xff] }
 0x26c   : > { %v1436_v50 = vsel %vm548_vm0, %v1434_v48, %v1435_v1  ;;  %v1433_v51 = vsel %vm548_vm0, %v1431_v5, %v1432_v49  ;;  %v1230_v48 = vld [vmem:[#allocation10 + $0x38] sm:$0xff]  ;;  %v1229_v5 = vld [vmem:[#allocation10 + $0x30] sm:$0xff] }
 0x26d   : > { %2038 = vmatprep.mubr.msk.f32.mxu0 %vm939_vm2, %v1436_v50  ;;  %2040 = vmatprep.mubr.msk.f32.mxu1 %vm939_vm2, %v1436_v50  ;;  %v1226_v50 = vld [vmem:[#allocation10 + $0x18] sm:$0xff] }
 0x26e   : > { %1508 = vmatmul.mubr.f32.vlgmr.msra.gmra.mxu0 %v1433_v51  ;;  %1585 = vmatmul.mubr.f32.vlgmr.msra.gmra.mxu1 %v1433_v51  ;;  %v1223_v51 = vld [vmem:[#allocation10] sm:$0xff] }
 0x26f   : > { %1604 = vmatpush1.msra.mxu0 %v1283_v4  ;;  %1681 = vmatpush1.msra.mxu1 %v1285_v52  ;;  %v1225_v4 = vld [vmem:[#allocation10 + $0x10] sm:$0xff]  ;;  %v1320_v52 = vld [vmem:[#allocation10 + $0x308] sm:$0xff] }
 0x270   : > { %2039 = vmatprep.mubr.msk.f32.mxu0 %vm939_vm2, %v1435_v1  ;;  %2041 = vmatprep.mubr.msk.f32.mxu1 %vm939_vm2, %v1435_v1  ;;  %v1227_v1 = vld [vmem:[#allocation10 + $0x20] sm:$0xff] }
 0x271   : > { %1605 = vmatprep.subr.mxu0 %v1280_v53  ;;  %1682 = vmatprep.subr.mxu1 %v1282_v54  ;;  %v1322_v53 = vld [vmem:[#allocation10 + $0x318] sm:$0xff]  ;;  %v1319_v54 = vld [vmem:[#allocation10 + $0x300] sm:$0xff] }
 0x272   : > { %1606 = vmatpush1.msra.mxu0 %v1279_v55  ;;  %1683 = vmatpush1.msra.mxu1 %v1281_v56  ;;  %v1321_v55 = vld [vmem:[#allocation10 + $0x310] sm:$0xff]  ;;  %v1316_v56 = vld [vmem:[#allocation10 + $0x2e8] sm:$0xff] }
 0x273   : > { %1607 = vmatprep.subr.mxu0 %v1276_v57  ;;  %1684 = vmatprep.subr.mxu1 %v1278_v58  ;;  %v1318_v57 = vld [vmem:[#allocation10 + $0x2f8] sm:$0xff]  ;;  %v1315_v58 = vld [vmem:[#allocation10 + $0x2e0] sm:$0xff] }
 0x274   : > { %1514 = vmatmul.mubr.f32.gmra.mxu0 %v1432_v49  ;;  %1591 = vmatmul.mubr.f32.gmra.mxu1 %v1432_v49  ;;  %v1224_v49 = vld [vmem:[#allocation10 + $0x8] sm:$0xff] }
 0x275   : > { %1608 = vmatpush1.msra.mxu0 %v1275_v59  ;;  %1685 = vmatpush1.msra.mxu1 %v1277_v60  ;;  %v1317_v59 = vld [vmem:[#allocation10 + $0x2f0] sm:$0xff]  ;;  %v1312_v60 = vld [vmem:[#allocation10 + $0x2c8] sm:$0xff] }
 0x276   : > { %1609 = vmatprep.subr.mxu0 %v1272_v3  ;;  %2042 = vmatprep.mubr.msk.f32.mxu0 %vm939_vm2, %v1220_v8  ;;  %v1314_v3 = vld [vmem:[#allocation10 + $0x2d8] sm:$0xff] }
 0x277   : > { %1686 = vmatprep.subr.mxu1 %v1274_v6  ;;  %2044 = vmatprep.mubr.msk.f32.mxu1 %vm939_vm2, %v1220_v8  ;;  %v1311_v6 = vld [vmem:[#allocation10 + $0x2c0] sm:$0xff]  ;;  %v1313_v8 = vld [vmem:[#allocation10 + $0x2d0] sm:$0xff] }
 0x278   : > { %1610 = vmatpush1.msra.mxu0 %v1271_v9  ;;  %1687 = vmatpush1.msra.mxu1 %v1273_v10  ;;  %v1308_v9 = vld [vmem:[#allocation10 + $0x2a8] sm:$0xff]  ;;  %v1310_v10 = vld [vmem:[#allocation10 + $0x2b8] sm:$0xff] }
 0x279   : > { %1611 = vmatprep.subr.mxu0 %v1268_v12  ;;  %1688 = vmatprep.subr.mxu1 %v1270_v14  ;;  %v1307_v12 = vld [vmem:[#allocation10 + $0x2a0] sm:$0xff]  ;;  %v1309_v14 = vld [vmem:[#allocation10 + $0x2b0] sm:$0xff] }
 0x27a   : > { %1612 = vmatpush1.msra.mxu0 %v1267_v15  ;;  %1689 = vmatpush1.msra.mxu1 %v1269_v16  ;;  %v1304_v15 = vld [vmem:[#allocation10 + $0x288] sm:$0xff]  ;;  %v1306_v16 = vld [vmem:[#allocation10 + $0x298] sm:$0xff] }
 0x27b   : > { %1613 = vmatprep.subr.mxu0 %v1264_v18  ;;  %1690 = vmatprep.subr.mxu1 %v1266_v19  ;;  %v1303_v18 = vld [vmem:[#allocation10 + $0x280] sm:$0xff]  ;;  %v1305_v19 = vld [vmem:[#allocation10 + $0x290] sm:$0xff] }
 0x27c   : > { %1614 = vmatpush1.msra.mxu0 %v1263_v20  ;;  %1691 = vmatpush1.msra.mxu1 %v1265_v21  ;;  %v1300_v20 = vld [vmem:[#allocation10 + $0x268] sm:$0xff]  ;;  %v1302_v21 = vld [vmem:[#allocation10 + $0x278] sm:$0xff] }
 0x27d   : > { %1615 = vmatprep.subr.mxu0 %v1260_v22  ;;  %1692 = vmatprep.subr.mxu1 %v1262_v23  ;;  %v1299_v22 = vld [vmem:[#allocation10 + $0x260] sm:$0xff]  ;;  %v1301_v23 = vld [vmem:[#allocation10 + $0x270] sm:$0xff] }
 0x27e   : > { %1616 = vmatpush1.msra.mxu0 %v1259_v24  ;;  %1693 = vmatpush1.msra.mxu1 %v1261_v25  ;;  %v1296_v24 = vld [vmem:[#allocation10 + $0x248] sm:$0xff]  ;;  %v1298_v25 = vld [vmem:[#allocation10 + $0x258] sm:$0xff] }
 0x27f   : > { %1617 = vmatprep.subr.mxu0 %v1256_v26  ;;  %1694 = vmatprep.subr.mxu1 %v1258_v27  ;;  %v1295_v26 = vld [vmem:[#allocation10 + $0x240] sm:$0xff]  ;;  %v1297_v27 = vld [vmem:[#allocation10 + $0x250] sm:$0xff] }
 0x280   : > { %1618 = vmatpush1.msra.mxu0 %v1255_v28  ;;  %1695 = vmatpush1.msra.mxu1 %v1257_v29  ;;  %v1292_v28 = vld [vmem:[#allocation10 + $0x228] sm:$0xff]  ;;  %v1294_v29 = vld [vmem:[#allocation10 + $0x238] sm:$0xff] }
 0x281   : > { %1619 = vmatprep.subr.mxu0 %v1252_v30  ;;  %1696 = vmatprep.subr.mxu1 %v1254_v31  ;;  %v1291_v30 = vld [vmem:[#allocation10 + $0x220] sm:$0xff]  ;;  %v1293_v31 = vld [vmem:[#allocation10 + $0x230] sm:$0xff] }
 0x282   : > { %1620 = vmatpush1.msra.mxu0 %v1251_v32  ;;  %1697 = vmatpush1.msra.mxu1 %v1253_v34  ;;  %v1288_v32 = vld [vmem:[#allocation10 + $0x208] sm:$0xff]  ;;  %v1290_v34 = vld [vmem:[#allocation10 + $0x218] sm:$0xff] }
 0x283   : > { %1621 = vmatprep.subr.mxu0 %v1248_v37  ;;  %1698 = vmatprep.subr.mxu1 %v1250_v38  ;;  %v1287_v37 = vld [vmem:[#allocation10 + $0x200] sm:$0xff]  ;;  %v1289_v38 = vld [vmem:[#allocation10 + $0x210] sm:$0xff] }
 0x284   : > { %1622 = vmatpush1.msra.mxu0 %v1247_v39  ;;  %1699 = vmatpush1.msra.mxu1 %v1249_v13  ;;  %v1219_v39 = vld [vmem:[#allocation2] sm:$0xff]  ;;  %v1222_v13 = vld [vmem:[#allocation2 + $0x18] sm:$0x7] }
 0x285   : > { %1623 = vmatprep.subr.mxu0 %v1244_v40  ;;  %1700 = vmatprep.subr.mxu1 %v1246_v7  ;;  %v1221_v40 = vld [vmem:[#allocation2 + $0x10] sm:$0x7]  ;;  %v1800_v7 = vld [vmem:[#allocation12 + $0xf8] sm:$0xff] }
 0x286   : > { %1624 = vmatpush1.msra.mxu0 %v1243_v41  ;;  %1701 = vmatpush1.msra.mxu1 %v1245_v42  ;;  %v1784_v41 = vld [vmem:[#allocation12 + $0x78] sm:$0xff]  ;;  %v1799_v42 = vld [vmem:[#allocation12 + $0xf0] sm:$0xff] }
 0x287   : > { %1625 = vmatprep.subr.mxu0 %v1240_v43  ;;  %1702 = vmatprep.subr.mxu1 %v1242_v11  ;;  %v1783_v43 = vld [vmem:[#allocation12 + $0x70] sm:$0xff]  ;;  %v1798_v11 = vld [vmem:[#allocation12 + $0xe8] sm:$0xff] }
 0x288   : > { %1626 = vmatpush1.msra.mxu0 %v1239_v17  ;;  %1703 = vmatpush1.msra.mxu1 %v1241_v44  ;;  %v1782_v17 = vld [vmem:[#allocation12 + $0x68] sm:$0xff]  ;;  %v1797_v44 = vld [vmem:[#allocation12 + $0xe0] sm:$0xff] }
 0x289   : > { %1627 = vmatprep.subr.mxu0 %v1236_v45  ;;  %1704 = vmatprep.subr.mxu1 %v1238_v61  ;;  %v1781_v45 = vld [vmem:[#allocation12 + $0x60] sm:$0xff]  ;;  %v1796_v61 = vld [vmem:[#allocation12 + $0xd8] sm:$0xff] }
 0x28a   : > { %1628 = vmatpush1.msra.mxu0 %v1235_v63  ;;  %1705 = vmatpush1.msra.mxu1 %v1237_v0  ;;  %v1780_v63 = vld [vmem:[#allocation12 + $0x58] sm:$0xff]  ;;  %v1795_v0 = vld [vmem:[#allocation12 + $0xd0] sm:$0xff] }
 0x28b   : > { %1629 = vmatprep.subr.mxu0 %v1232_v2  ;;  %1706 = vmatprep.subr.mxu1 %v1234_v62  ;;  %v1779_v2 = vld [vmem:[#allocation12 + $0x50] sm:$0xff]  ;;  %v1794_v62 = vld [vmem:[#allocation12 + $0xc8] sm:$0xff] }
 0x28c   : > { %1630 = vmatpush1.msra.mxu0 %v1231_v46  ;;  %1707 = vmatpush1.msra.mxu1 %v1233_v36  ;;  %v1778_v46 = vld [vmem:[#allocation12 + $0x48] sm:$0xff]  ;;  %v1793_v36 = vld [vmem:[#allocation12 + $0xc0] sm:$0xff] }
 0x28d   : > { %1631 = vmatprep.subr.mxu0 %v1228_v47  ;;  %1708 = vmatprep.subr.mxu1 %v1230_v48  ;;  %v1777_v47 = vld [vmem:[#allocation12 + $0x40] sm:$0xff]  ;;  %v1792_v48 = vld [vmem:[#allocation12 + $0xb8] sm:$0xff] }
 0x28e   : > { %1632 = vmatpush1.msra.mxu0 %v1227_v1  ;;  %1709 = vmatpush1.msra.mxu1 %v1229_v5  ;;  %v1776_v1 = vld [vmem:[#allocation12 + $0x38] sm:$0xff]  ;;  %v1791_v5 = vld [vmem:[#allocation12 + $0xb0] sm:$0xff] }
 0x28f   : > { %1633 = vmatprep.subr.mxu0 %v1224_v49  ;;  %1710 = vmatprep.subr.mxu1 %v1226_v50  ;;  %v1775_v49 = vld [vmem:[#allocation12 + $0x30] sm:$0xff]  ;;  %v1790_v50 = vld [vmem:[#allocation12 + $0xa8] sm:$0xff] }
 0x290   : > { %1634 = vmatpush1.msra.mxu0 %v1223_v51  ;;  %1711 = vmatpush1.msra.mxu1 %v1225_v4  ;;  %v1774_v51 = vld [vmem:[#allocation12 + $0x28] sm:$0xff]  ;;  %v1789_v4 = vld [vmem:[#allocation12 + $0xa0] sm:$0xff] }
 0x291   : > { %1649 = vmatprep.subr.mxu0 %v1320_v52  ;;  %1726 = vmatprep.subr.mxu1 %v1322_v53  ;;  %v1773_v52 = vld [vmem:[#allocation12 + $0x20] sm:$0xff]  ;;  %v1788_v53 = vld [vmem:[#allocation12 + $0x98] sm:$0xff] }
 0x292   : > { %1650 = vmatpush2.msra.mxu0 %v1319_v54  ;;  %1727 = vmatpush2.msra.mxu1 %v1321_v55  ;;  %v1772_v54 = vld [vmem:[#allocation12 + $0x18] sm:$0xff]  ;;  %v1787_v55 = vld [vmem:[#allocation12 + $0x90] sm:$0xff] }
 0x293   : > { %1651 = vmatprep.subr.mxu0 %v1316_v56  ;;  %1728 = vmatprep.subr.mxu1 %v1318_v57  ;;  %v1771_v56 = vld [vmem:[#allocation12 + $0x10] sm:$0xff]  ;;  %v1786_v57 = vld [vmem:[#allocation12 + $0x88] sm:$0xff] }
 0x294   : > { %1652 = vmatpush2.msra.mxu0 %v1315_v58  ;;  %1729 = vmatpush2.msra.mxu1 %v1317_v59  ;;  %v1770_v58 = vld [vmem:[#allocation12 + $0x8] sm:$0xff]  ;;  %v1785_v59 = vld [vmem:[#allocation12 + $0x80] sm:$0xff] }
 0x295   : > { %1653 = vmatprep.subr.mxu0 %v1312_v60  ;;  %1730 = vmatprep.subr.mxu1 %v1314_v3  ;;  %v1769_v60 = vld [vmem:[#allocation12] sm:$0xff] }
 0x296   : > { %1654 = vmatpush2.msra.mxu0 %v1311_v6  ;;  %1731 = vmatpush2.msra.mxu1 %v1313_v8 }
 0x297   : > { %1655 = vmatprep.subr.mxu0 %v1308_v9  ;;  %1732 = vmatprep.subr.mxu1 %v1310_v10 }
 0x298   : > { %1656 = vmatpush2.msra.mxu0 %v1307_v12  ;;  %1733 = vmatpush2.msra.mxu1 %v1309_v14 }
 0x299   : > { %1657 = vmatprep.subr.mxu0 %v1304_v15  ;;  %1734 = vmatprep.subr.mxu1 %v1306_v16 }
 0x29a   : > { %1658 = vmatpush2.msra.mxu0 %v1303_v18  ;;  %1735 = vmatpush2.msra.mxu1 %v1305_v19 }
 0x29b   : > { %1659 = vmatprep.subr.mxu0 %v1300_v20  ;;  %1736 = vmatprep.subr.mxu1 %v1302_v21 }
 0x29c   : > { %1660 = vmatpush2.msra.mxu0 %v1299_v22  ;;  %1737 = vmatpush2.msra.mxu1 %v1301_v23 }
 0x29d   : > { %1661 = vmatprep.subr.mxu0 %v1296_v24  ;;  %1738 = vmatprep.subr.mxu1 %v1298_v25 }
 0x29e   : > { %1662 = vmatpush2.msra.mxu0 %v1295_v26  ;;  %1739 = vmatpush2.msra.mxu1 %v1297_v27 }
 0x29f   : > { %1663 = vmatprep.subr.mxu0 %v1292_v28  ;;  %1740 = vmatprep.subr.mxu1 %v1294_v29 }
 0x2a0   : > { %1664 = vmatpush2.msra.mxu0 %v1291_v30  ;;  %1741 = vmatpush2.msra.mxu1 %v1293_v31 }
 0x2a1   : > { %1665 = vmatprep.subr.mxu0 %v1288_v32  ;;  %1742 = vmatprep.subr.mxu1 %v1290_v34 }
 0x2a2   : > { %1666 = vmatpush2.msra.mxu0 %v1287_v37  ;;  %1743 = vmatpush2.msra.mxu1 %v1289_v38 }
 0x2a3   : > { %1668 = vmatmul.mubr.f32.vlgmr.msra.gmra.mxu0 %v1219_v39  ;;  %1745 = vmatmul.mubr.f32.vlgmr.msra.gmra.mxu1 %v1219_v39 }
 0x2a4   : > { %2043 = vmatprep.mubr.msk.f32.mxu0 %vm939_vm2, %v1222_v13  ;;  %2045 = vmatprep.mubr.msk.f32.mxu1 %vm939_vm2, %v1222_v13 }
 0x2a5   : > { %2053 = vmatprep.subr.mxu0 %v1800_v7  ;;  %2091 = vmatprep.subr.mxu1 %v1800_v7 }
 0x2a6   : > { %2054 = vmatpush3.msra.mxu0 %v1784_v41  ;;  %2107 = vmatpush3.msra.mxu1 %v1784_v41 }
 0x2a7   : > { %1674 = vmatmul.mubr.f32.gmra.mxu0 %v1221_v40  ;;  %1751 = vmatmul.mubr.f32.gmra.mxu1 %v1221_v40 }
 0x2a8   : > { %2055 = vmatprep.subr.mxu0 %v1799_v42  ;;  %2092 = vmatprep.subr.mxu1 %v1799_v42 }
 0x2a9   : > { %2056 = vmatpush3.msra.mxu0 %v1783_v43  ;;  %2108 = vmatpush3.msra.mxu1 %v1783_v43 }
 0x2aa   : > { %2057 = vmatprep.subr.mxu0 %v1798_v11  ;;  %2093 = vmatprep.subr.mxu1 %v1798_v11 }
 0x2ab   : > { %2058 = vmatpush3.msra.mxu0 %v1782_v17  ;;  %2109 = vmatpush3.msra.mxu1 %v1782_v17 }
 0x2ac   : > { %2059 = vmatprep.subr.mxu0 %v1797_v44  ;;  %2094 = vmatprep.subr.mxu1 %v1797_v44  ;;  %v1883_v44 = vstv %s1876_s18 }
 0x2ad   : > { %2060 = vmatpush3.msra.mxu0 %v1781_v45  ;;  %2110 = vmatpush3.msra.mxu1 %v1781_v45  ;;  %v1885_v45 = vstv %s2046_s24  ;;  %vm2615_vm9 = vcmp.ge.s32.totalorder %v2595_v33, %v1883_v44 }
 0x2ae   : > { %2061 = vmatprep.subr.mxu0 %v1796_v61  ;;  %2095 = vmatprep.subr.mxu1 %v1796_v61  ;;  %v1888_v61 = vstv %s2047_s25  ;;  %vm2620_vm10 = vcmp.lt.s32.totalorder %v2595_v33, %v1885_v45 }
 0x2af   : > { %2062 = vmatpush3.msra.mxu0 %v1780_v63  ;;  %2111 = vmatpush3.msra.mxu1 %v1780_v63  ;;  %v1891_v63 = vstv %s2048_s26  ;;  %vm1889_vm11 = vcmp.ge.s32.totalorder %v2597_v35, %v1888_v61  ;;  %vm1887_vm13 = vmand %vm2615_vm9, %vm2620_vm10 }
 0x2b0   : > { %2063 = vmatprep.subr.mxu0 %v1795_v0  ;;  %2096 = vmatprep.subr.mxu1 %v1795_v0  ;;  %vm1892_vm12 = vcmp.lt.s32.totalorder %v2597_v35, %v1891_v63 }
 0x2b1   : > { %2064 = vmatpush3.msra.mxu0 %v1779_v2  ;;  %2112 = vmatpush3.msra.mxu1 %v1779_v2  ;;  %vm1894_vm14 = vmand %vm1889_vm11, %vm1892_vm12 }
 0x2b2   : > { %2065 = vmatprep.subr.mxu0 %v1794_v62  ;;  %2097 = vmatprep.subr.mxu1 %v1794_v62  ;;  %v1882_v62 = vadd.s32 8, %v2597_v35  ;;  %vm1902_vm1 = vmor %vm1887_vm13, %vm1894_vm14 }
 0x2b3   : > { %2066 = vmatpush3.msra.mxu0 %v1778_v46  ;;  %2113 = vmatpush3.msra.mxu1 %v1778_v46 }
 0x2b4   : > { %2067 = vmatprep.subr.mxu0 %v1793_v36  ;;  %2098 = vmatprep.subr.mxu1 %v1793_v36  ;;  %vm1890_vm15 = vcmp.ge.s32.totalorder %v1882_v62, %v1888_v61  ;;  %vm1893_vm0 = vcmp.lt.s32.totalorder %v1882_v62, %v1891_v63 }
 0x2b5   : > { %2068 = vmatpush3.msra.mxu0 %v1777_v47  ;;  %2114 = vmatpush3.msra.mxu1 %v1777_v47  ;;  %vm1895_vm2 = vmand %vm1890_vm15, %vm1893_vm0 }
 0x2b6   : > { %2069 = vmatprep.subr.mxu0 %v1792_v48  ;;  %2099 = vmatprep.subr.mxu1 %v1792_v48  ;;  %vm1903_vm3 = vmor %vm1887_vm13, %vm1895_vm2 }
 0x2b7   : > { %2070 = vmatpush3.msra.mxu0 %v1776_v1  ;;  %2115 = vmatpush3.msra.mxu1 %v1776_v1 }
 0x2b8   : > { %2071 = vmatprep.subr.mxu0 %v1791_v5  ;;  %2100 = vmatprep.subr.mxu1 %v1791_v5 }
 0x2b9   : > { %2072 = vmatpush3.msra.mxu0 %v1775_v49  ;;  %2116 = vmatpush3.msra.mxu1 %v1775_v49 }
 0x2ba   : > { %2073 = vmatprep.subr.mxu0 %v1790_v50  ;;  %2101 = vmatprep.subr.mxu1 %v1790_v50 }
 0x2bb   : > { %2074 = vmatpush3.msra.mxu0 %v1774_v51  ;;  %2117 = vmatpush3.msra.mxu1 %v1774_v51 }
 0x2bc   : > { %2075 = vmatprep.subr.mxu0 %v1789_v4  ;;  %2102 = vmatprep.subr.mxu1 %v1789_v4 }
 0x2bd   : > { %2076 = vmatpush3.msra.mxu0 %v1773_v52  ;;  %2118 = vmatpush3.msra.mxu1 %v1773_v52 }
 0x2be   : > { %2077 = vmatprep.subr.mxu0 %v1788_v53  ;;  %2103 = vmatprep.subr.mxu1 %v1788_v53 }
 0x2bf   : > { %2078 = vmatpush3.msra.mxu0 %v1772_v54  ;;  %2119 = vmatpush3.msra.mxu1 %v1772_v54 }
 0x2c0   : > { %2079 = vmatprep.subr.mxu0 %v1787_v55  ;;  %2104 = vmatprep.subr.mxu1 %v1787_v55 }
 0x2c1   : > { %2080 = vmatpush3.msra.mxu0 %v1771_v56  ;;  %2120 = vmatpush3.msra.mxu1 %v1771_v56 }
 0x2c2   : > { %2081 = vmatprep.subr.mxu0 %v1786_v57  ;;  %2105 = vmatprep.subr.mxu1 %v1786_v57 }
 0x2c3   : > { %2082 = vmatpush3.msra.mxu0 %v1770_v58  ;;  %2121 = vmatpush3.msra.mxu1 %v1770_v58 }
 0x2c4   : > { %2083 = vmatprep.subr.mxu0 %v1785_v59  ;;  %2106 = vmatprep.subr.mxu1 %v1785_v59 }
 0x2c5   : > { %2084 = vmatpush3.msra.mxu0 %v1769_v60  ;;  %2122 = vmatpush3.msra.mxu1 %v1769_v60 }
 0x32e   : > { %v1509_v3 = vpop.f32.mrf.mxu0  ;;  %v1586_v6 = vpop.f32.mrf.mxu1 }
 0x330   : > { %v1511_v8 = vpop.f32.mrf.mxu0  ;;  %v1588_v9 = vpop.f32.mrf.mxu1 }
 0x334   : > { %v1515_v10 = vpop.f32.mrf.mxu0  ;;  %v1592_v12 = vpop.f32.mrf.mxu1 }
 0x336   : > { %v1517_v14 = vpop.f32.mrf.mxu0  ;;  %v1594_v15 = vpop.f32.mrf.mxu1 }
 0x363   : > { %v1669_v16 = vpop.f32.mrf.mxu0  ;;  %v1746_v18 = vpop.f32.mrf.mxu1 }
 0x364   : > { %v1670_v19 = vadd.f32 %v1669_v16, %v1509_v3  ;;  %v1747_v20 = vadd.f32 %v1746_v18, %v1586_v6 }
 0x365   : > { %v1671_v21 = vpop.f32.mrf.mxu0  ;;  %v1748_v22 = vpop.f32.mrf.mxu1 }
 0x366   : > { %v1672_v23 = vadd.f32 %v1671_v21, %v1511_v8  ;;  %v1749_v24 = vadd.f32 %v1748_v22, %v1588_v9  ;;  %v1757_v25 = vmul.f32 %v1670_v19, %v1670_v19  ;;  %v1761_v26 = vmul.f32 %v1747_v20, %v1747_v20 }
 0x367   : > { %v1675_v27 = vpop.f32.mrf.mxu0  ;;  %v1752_v28 = vpop.f32.mrf.mxu1 }
 0x368   : > { %v1758_v29 = vmul.f32 %v1672_v23, %v1672_v23  ;;  %v1762_v30 = vmul.f32 %v1749_v24, %v1749_v24  ;;  %v1676_v31 = vadd.f32 %v1675_v27, %v1515_v10  ;;  %v1753_v32 = vadd.f32 %v1752_v28, %v1592_v12 }
 0x369   : > { %v1677_v34 = vpop.f32.mrf.mxu0  ;;  %v1754_v37 = vpop.f32.mrf.mxu1  ;;  %v1765_v40 = vadd.f32 %v1761_v26, %v1757_v25 }
 0x36a   : > { %v1766_v38 = vadd.f32 %v1762_v30, %v1758_v29  ;;  %v1678_v39 = vadd.f32 %v1677_v34, %v1517_v14  ;;  %v1755_v13 = vadd.f32 %v1754_v37, %v1594_v15  ;;  %v1759_v7 = vmul.f32 %v1676_v31, %v1676_v31 }
 0x36b   : > { %v1763_v41 = vmul.f32 %v1753_v32, %v1753_v32 }
 0x36c   : > { %v1760_v42 = vmul.f32 %v1678_v39, %v1678_v39  ;;  %v1764_v43 = vmul.f32 %v1755_v13, %v1755_v13  ;;  %1865 = vmatprep.mubr.f32.mxu0 %v1766_v38 }
 0x36d   : > { %1866 = vmatmul.mubr.f32.vlgmr.msra.gmra.mxu0 %v1765_v40  ;;  %v1767_v17 = vadd.f32 %v1763_v41, %v1759_v7 }
 0x36e   : > { %v1768_v11 = vadd.f32 %v1764_v43, %v1760_v42 }
 0x370   : > { %1870 = vmatprep.mubr.f32.mxu1 %v1768_v11 }
 0x371   : > { %1871 = vmatmul.mubr.f32.vlgmr.msra.gmra.mxu1 %v1767_v17 }
 0x42d   : > { %v2085_v46 = vpop.f32.mrf.mxu0 }
 0x42f   : > { %v2086_v33 = vpop.f32.mrf.mxu0 }
 0x430   : > { %v2087_v35 = vadd.f32 %v2086_v33, %v2085_v46 }
 0x431   : > { %v2088_v36 = vpop.f32.mrf.mxu1 }
 0x432   : > { %v1904_v47 = vsel %vm1902_vm1, 0.0, %v2087_v35 }
 0x433   : > { %1906 = vst [vmem:[%s331_s9] sm:$0xff] %v1904_v47  ;;  %v2089_v48 = vpop.f32.mrf.mxu1 }
 0x434   : > { %v2090_v1 = vadd.f32 %v2089_v48, %v2088_v36 }
 0x436   : > { %v1905_v5 = vsel %vm1903_vm3, 0.0, %v2090_v1 }
 0x437   : > { %1907 = vst [vmem:[%s331_s9 + $0x8] sm:$0x7] %v1905_v5 }
 0x438 PF: > { %s26_s29 = sadd.s32 1, %s2352_s29  }
 0x439   : > { %p23_p8 = scmp.ge.s32.totalorder %s26_s29, 4  }
 0x43b   :  { %25 = sbr.rel (!%p23_p8) target bundleno = 18 (0x12), region = 97 }
 0x440   :  { %1929 = vsyncpa [#allocation6], 1 }
 0x441   :  { %1931 = vsyncpa [#allocation6 + $0x1], 1 }
 0x442   :  { %1932 = vsyncpa [#allocation8], 1 }
 0x443   :  { %1933 = vsyncpa [#allocation11], 1 }

</bundles_post_ra>
